<compile_context>
chip_gen: v6e
topology: v6e:2x2x1
jax: 0.10.0
libtpu: 0.0.40
codegen_flags: <defaults>
</compile_context>

<pallas_src>
import math

import jax
import jax.numpy as jnp
import jax.scipy.linalg as jsl
from jax.experimental import pallas as pl
from jax.experimental.pallas import tpu as pltpu

# ----------------------------- module constants (small-shape config) -----------------------------
N_TIME = 4            # reference: 10
N_SENSORS = 4         # reference: 10
N_TRUE_SENSORS = 2    # reference: 2
SPACE_RANGE = 10.0
THETA_NOT = 1.0
THETA_SPACE = 8.0
THETA_TIME = 10.0
NOISE = 0.01
ALPHA_MEAN = 1.0
ALPHA_VARIANCE = 0.25
BIAS_MEAN = 0.0
BIAS_VARIANCE = 1.0

N_TRAIN = N_SENSORS * N_TIME          # rows of X / Sigma
N_TEST = N_TRUE_SENSORS * N_TIME      # rows of Xt
LOG_2PI = math.log(2.0 * math.pi)

# lane-dense packed stats slab emitted by the bias-stats kernel
STATS_LANES = 128
_HOLDER_COL = 0                       # k*^T S^-1 k*
_GBLK_COL = 1                         # per-sensor block sums (Ns columns)
_GY_COL = 1 + N_SENSORS               # k*^T S^-1 y

_VMEM = pl.BlockSpec(memory_space=pltpu.MemorySpace.VMEM)
_SMEM = pl.BlockSpec(memory_space=pltpu.MemorySpace.SMEM)


# ----------------------------------------- Pallas kernels ----------------------------------------
def _bias_stats_body(qs_ref, qt_ref, xs_ref, xt_ref, shi_ref, eaug_ref, stats_ref):
    # K* built in-VMEM from split coordinates (no HBM round trip), then the calc_bias_matrix
    # contractions with Sigma_hat^-1 and the merged [E | y] matrix; all results packed into
    # one lane-dense (N_TEST, 128) slab.
    dx = qs_ref[...] - xs_ref[...]                          # (Nt, n)
    dt = qt_ref[...] - xt_ref[...]
    k = THETA_NOT * jnp.exp(-(dx * dx) / THETA_SPACE - (dt * dt) / THETA_TIME)
    g = jnp.dot(k, shi_ref[...], preferred_element_type=jnp.float32)        # K* S^-1   (Nt, n)
    holder = jnp.sum(g * k, axis=-1, keepdims=True)                         # (Nt, 1)
    ge = jnp.dot(g, eaug_ref[...], preferred_element_type=jnp.float32)      # (Nt, Ns+1) = [gblk|gy]
    stats_ref[...] = jnp.zeros_like(stats_ref)              # deterministic unused lanes
    stats_ref[:, _HOLDER_COL:_HOLDER_COL + 1] = holder
    stats_ref[:, _GBLK_COL:_GBLK_COL + N_SENSORS + 1] = ge


def _bias_stats_call(qs, qt, xs, xt, shat_inv, e_aug):
    return pl.pallas_call(
        _bias_stats_body,
        out_shape=jax.ShapeDtypeStruct((qs.shape[0], STATS_LANES), jnp.float32),
        in_specs=[_VMEM] * 6,
        out_specs=_VMEM,
    )(qs, qt, xs, xt, shat_inv, e_aug)


def _posterior_body(qs_ref, qt_ref, xs_ref, xt_ref, m_ref, y_ref, b_ref, yt_ref, sc_ref, o_ref):
    # K* rows rebuilt from coordinates (cheaper than an HBM export/re-import of kernel #1's K*).
    dx = qs_ref[...] - xs_ref[...]                          # (Nt, n)
    dt = qt_ref[...] - xt_ref[...]
    k = THETA_NOT * jnp.exp(-(dx * dx) / THETA_SPACE - (dt * dt) / THETA_TIME)
    m = m_ref[...]                                          # (n, n) reference "cholesky_inverse"
    r = y_ref[...] - b_ref[...]                             # (n, n) Y - extend_bias, one VPU bcast
    # chunk4: v(x), mu(x) and the log-likelihood over all test points at once
    h = jnp.dot(k, m, preferred_element_type=jnp.float32)   # (Nt, n)
    q = jnp.sum(h * k, axis=-1, keepdims=True)              # (Nt, 1)
    v = jnp.abs(sc_ref[0, 0] - q)        # reference returns abs(output) for negative variance
    v = jnp.maximum(v, 1e-30)            # only triggers where the reference would emit inf/nan
    mu = jnp.dot(h, r, preferred_element_type=jnp.float32)  # (Nt, n)
    term = -jnp.log(v) - (yt_ref[...] - mu) ** 2 / v - LOG_2PI   # exact divide for parity
    chunk4 = 0.5 * jnp.sum(term, axis=0, keepdims=True)     # (1, n)
    # chunk2 = -1/2 * R^T M R at its natural (n, n) size (no padded 128x128 block)
    mr = jnp.dot(m, r, preferred_element_type=jnp.float32)  # (n, n)
    c2 = jax.lax.dot_general(r, mr, (((0,), (0,)), ((), ())),
                             preferred_element_type=jnp.float32)   # R^T M R
    # final result = (chunk1 + chunk3) + chunk2 + chunk4; the -1/2 is folded into this single
    # epilogue VPU pass (no separate full-output scaling pass, no XLA combine afterwards).
    o_ref[...] = sc_ref[0, 1] - 0.5 * c2 + chunk4


def _posterior_call(qs, qt, xs, xt, chol_inv, y_row, bias_col, yt_col, scalars):
    n = chol_inv.shape[0]
    return pl.pallas_call(
        _posterior_body,
        out_shape=jax.ShapeDtypeStruct((n, n), jnp.float32),
        in_specs=[_VMEM] * 8 + [_SMEM],
        out_specs=_VMEM,
    )(qs, qt, xs, xt, chol_inv, y_row, bias_col, yt_col, scalars)


# --------------------------------------------- forward -------------------------------------------
@jax.jit
def zak_gpr_forward(X, Y, Sigma, alpha, Xt, Yt):
    n = Sigma.shape[0]
    f32 = jnp.float32
    alpha = alpha.astype(f32)
    a2 = alpha ** 2                                                    # (1,)
    Sigma_hat = a2 * Sigma.astype(f32) + jnp.eye(n, dtype=f32) * NOISE

    # --- one Cholesky factorization drives logdet + both "inverses" (no LU / explicit inv) ---
    chol = jnp.linalg.cholesky(Sigma_hat)                              # lower factor (PD matrix)
    chunk1 = jnp.sum(jnp.log(jnp.diag(chol)))                          # == 0.5 * logdet(Sigma_hat)
    eye_n = jnp.eye(n, dtype=f32)
    shat_inv = jsl.cho_solve((chol, True), eye_n)                      # Sigma_hat^-1
    # Reference misuses torch.cholesky_inverse(Sigma_hat): LAPACK potri reads only the lower
    # triangle, so it equals inv(tril(Sigma_hat) @ tril(Sigma_hat)^T) -> two triangular solves.
    chol_inv = jsl.cho_solve((jnp.tril(Sigma_hat), True), eye_n)

    y_row = Y.reshape(1, -1).astype(f32)                               # (1, n)
    y_col = y_row.T                                                    # (n, 1)
    yt_flat = Yt.reshape(-1).astype(f32)                               # (Nt,)
    yt_col = yt_flat[:, None]                                          # (Nt, 1)
    # TODO(synk): reference indexes Y / true_Y inconsistently ((1,N) vs column); interpreted as
    # column vector y_col and flattened yt, the only shape-consistent reading.

    qs, qt = Xt[:, 0:1].astype(f32), Xt[:, 1:2].astype(f32)            # (Nt, 1) test coords
    xs = X[:, 0][None, :].astype(f32)                                  # (1, n) train coords
    xt = X[:, 1][None, :].astype(f32)

    E = jnp.kron(jnp.eye(N_SENSORS, dtype=f32), jnp.ones((N_TIME, 1), f32))    # (n, Ns)
    e_aug = jnp.concatenate([E, y_col], axis=1)                        # (n, Ns+1) -> [gblk | gy]

    # ---- Pallas call #1: K* in-VMEM + calc_bias_matrix statistics (one lane-dense slab) ----
    stats = _bias_stats_call(qs, qt, xs, xt, shat_inv, e_aug)          # (Nt, 128)
    holder = stats[:, _HOLDER_COL]                                     # k*^T S^-1 k*   (Nt,)
    gblk = stats[:, _GBLK_COL:_GBLK_COL + N_SENSORS]                   # per-sensor sums (Nt, Ns)
    gy = stats[:, _GY_COL]                                             # k*^T S^-1 y    (Nt,)

    # tiny (Ns x Ns) bias linear system (vectorised, mathematically equivalent to the
    # reference calc_bias_matrix loop); solved, not inverted.
    # TODO(synk): no guard on the w denominator (inherited from the reference).
    w = 1.0 / (THETA_NOT / a2[0] - holder)                             # (Nt,)
    A = (gblk * w[:, None]).T @ gblk + (E.T @ shat_inv @ E).T \
        + jnp.eye(N_SENSORS, dtype=f32) / BIAS_VARIANCE
    c_vec = (y_col[:, 0] @ shat_inv) @ E + ((gy - yt_flat) * w) @ gblk \
        + BIAS_MEAN / BIAS_VARIANCE
    bias_vec = jnp.linalg.solve(A.T, c_vec)                            # == c_vec @ inv(A)
    bias = bias_vec[None, :]                                           # (1, Ns)
    extend_bias = jnp.repeat(bias_vec, N_TIME)[:, None]                # (n, 1)

    prob_a = -0.5 * ((alpha - ALPHA_MEAN) ** 2 / ALPHA_VARIANCE) \
        + math.log(ALPHA_VARIANCE * math.sqrt(2.0 * math.pi))          # (1,)
    prob_b = -0.5 * ((bias - BIAS_MEAN) ** 2 / BIAS_VARIANCE) \
        + math.log(BIAS_VARIANCE * math.sqrt(2.0 * math.pi))           # (1, Ns)
    # reference divides by len(prob_b) == first dim == 1 (bias is a (1, Ns) row vector)
    chunk3 = -(N_SENSORS / 2.0) * LOG_2PI + prob_a[0] + jnp.sum(prob_b) / prob_b.shape[0]

    # scalars for the posterior kernel: predictive-variance scale and the chunk1+chunk3 offset
    scalars = jnp.stack([THETA_NOT / a2[0], chunk1 + chunk3]).reshape(1, 2).astype(f32)

    # ---- Pallas call #2: emits chunk1 + chunk2 + chunk3 + chunk4 == the final (n, n) output ----
    return _posterior_call(qs, qt, xs, xt, chol_inv, y_row, extend_bias, yt_col, scalars)


# -------------------------------------------- demo -----------------------------------------------
def _rbf(A, B):
    # plain-jnp pairwise space-time RBF (reference `kernel`); only used for Sigma setup, where a
    # Pallas dispatch for a (16,16) output would be pure overhead.
    dx = A[:, 0][:, None] - B[:, 0][None, :]
    dt = A[:, 1][:, None] - B[:, 1][None, :]
    return THETA_NOT * jnp.exp(-dx * dx / THETA_SPACE - dt * dt / THETA_TIME)


def _synthetic_field(s, t):
    # stand-in for the reference GP-sample `f` (deterministic, smooth)
    return jnp.sin(0.7 * s)[:, None] * jnp.cos(0.4 * t)[None, :] + 0.1 * s[:, None]


if __name__ == "__main__":
    key = jax.random.PRNGKey(0)
    k_alpha, k_bias, k_noise = jax.random.split(key, 3)

    sensors = jnp.linspace(0.0, SPACE_RANGE, N_SENSORS)
    sensor_time = jnp.linspace(0.0, SPACE_RANGE, N_TIME)
    true_sensors = jnp.linspace(0.0, SPACE_RANGE, N_TRUE_SENSORS)
    true_time = jnp.linspace(0.0, SPACE_RANGE, N_TIME)

    # X / Xt follow the reference ordering: (sensor-major, time-minor) grid of [space, time]
    X = jnp.stack([jnp.repeat(sensors, N_TIME),
                   jnp.tile(sensor_time, N_SENSORS)], axis=1).astype(jnp.float32)
    Xt = jnp.stack([jnp.repeat(true_sensors, N_TIME),
                    jnp.tile(true_time, N_TRUE_SENSORS)], axis=1).astype(jnp.float32)

    # alpha parameter ~ N(alpha_mean, alpha_variance), deterministic via PRNGKey(0)
    alpha = (ALPHA_MEAN + ALPHA_VARIANCE * jax.random.normal(k_alpha, (1,))).astype(jnp.float32)

    # Sigma (= K = kron(space_kernel, time_kernel) for grid-ordered points)
    Sigma = _rbf(X, X).astype(jnp.float32)

    # synthetic sensor data:  alpha * f + per-sensor bias + noise
    sensor_bias = (BIAS_MEAN + BIAS_VARIANCE *
                   jax.random.normal(k_bias, (N_SENSORS,))).astype(jnp.float32)
    data = (alpha[0] * _synthetic_field(sensors, sensor_time)
            + sensor_bias[:, None]
            + NOISE * jax.random.normal(k_noise, (N_SENSORS, N_TIME))).astype(jnp.float32)
    Y = data.reshape(1, -1)                                             # (1, N_train)

    true_data = _synthetic_field(true_sensors, true_time).astype(jnp.float32)
    Yt = true_data.reshape(1, -1)                                       # (1, N_test)

    out = zak_gpr_forward(X, Y, Sigma, alpha, Xt, Yt)
    out = jax.block_until_ready(out)
    assert out.shape == (N_TRAIN, N_TRAIN)
    assert bool(jnp.all(jnp.isfinite(out)))
    print("KERNEL_OK")
</pallas_src>

<mosaic_0001>
module attributes {stable_mosaic.version = 11 : i64} {
  func.func @_bias_stats_body(%arg0: memref<8x1xf32, #tpu.memory_space<vmem>>, %arg1: memref<8x1xf32, #tpu.memory_space<vmem>>, %arg2: memref<1x16xf32, #tpu.memory_space<vmem>>, %arg3: memref<1x16xf32, #tpu.memory_space<vmem>>, %arg4: memref<16x16xf32, #tpu.memory_space<vmem>>, %arg5: memref<16x5xf32, #tpu.memory_space<vmem>>, %arg6: memref<8x128xf32, #tpu.memory_space<vmem>>) attributes {dimension_semantics = [], scalar_prefetch = 0 : i64, scratch_operands = 0 : i64, tpu.core_type = #tpu.core_type<tc>} {
    %c0 = arith.constant 0 : index
    %c0_0 = arith.constant 0 : index
    %0 = vector.load %arg0[%c0, %c0_0] : memref<8x1xf32, #tpu.memory_space<vmem>>, vector<8x1xf32>
    %c0_1 = arith.constant 0 : index
    %c0_2 = arith.constant 0 : index
    %1 = vector.load %arg2[%c0_1, %c0_2] : memref<1x16xf32, #tpu.memory_space<vmem>>, vector<1x16xf32>
    %2 = vector.broadcast %0 : vector<8x1xf32> to vector<8x16xf32>
    %3 = vector.broadcast %1 : vector<1x16xf32> to vector<8x16xf32>
    %4 = arith.subf %2, %3 : vector<8x16xf32>
    %c0_3 = arith.constant 0 : index
    %c0_4 = arith.constant 0 : index
    %5 = vector.load %arg1[%c0_3, %c0_4] : memref<8x1xf32, #tpu.memory_space<vmem>>, vector<8x1xf32>
    %c0_5 = arith.constant 0 : index
    %c0_6 = arith.constant 0 : index
    %6 = vector.load %arg3[%c0_5, %c0_6] : memref<1x16xf32, #tpu.memory_space<vmem>>, vector<1x16xf32>
    %7 = vector.broadcast %5 : vector<8x1xf32> to vector<8x16xf32>
    %8 = vector.broadcast %6 : vector<1x16xf32> to vector<8x16xf32>
    %9 = arith.subf %7, %8 : vector<8x16xf32>
    %10 = arith.mulf %4, %4 : vector<8x16xf32>
    %cst = arith.constant 0.000000e+00 : f32
    %11 = vector.broadcast %cst : f32 to vector<8x16xf32>
    %12 = arith.subf %11, %10 : vector<8x16xf32>
    %cst_7 = arith.constant 8.000000e+00 : f32
    %13 = vector.broadcast %cst_7 : f32 to vector<8x16xf32>
    %14 = arith.divf %12, %13 : vector<8x16xf32>
    %15 = arith.mulf %9, %9 : vector<8x16xf32>
    %cst_8 = arith.constant 1.000000e+01 : f32
    %16 = vector.broadcast %cst_8 : f32 to vector<8x16xf32>
    %17 = arith.divf %15, %16 : vector<8x16xf32>
    %18 = arith.subf %14, %17 : vector<8x16xf32>
    %19 = math.exp %18 : vector<8x16xf32>
    %cst_9 = arith.constant 1.000000e+00 : f32
    %20 = vector.broadcast %cst_9 : f32 to vector<8x16xf32>
    %21 = arith.mulf %20, %19 : vector<8x16xf32>
    %c0_10 = arith.constant 0 : index
    %c0_11 = arith.constant 0 : index
    %22 = vector.load %arg4[%c0_10, %c0_11] : memref<16x16xf32, #tpu.memory_space<vmem>>, vector<16x16xf32>
    %cst_12 = arith.constant dense<0.000000e+00> : vector<8x16xf32>
    %23 = tpu.matmul %21, %22, %cst_12 {dimension_numbers = #tpu.dot_dimension_numbers<[1], [0], [0], [1], [0, 0, 1, 1], [], []>} : vector<8x16xf32>, vector<16x16xf32>, vector<8x16xf32> -> vector<8x16xf32>
    %24 = arith.mulf %23, %21 : vector<8x16xf32>
    %cst_13 = arith.constant dense<0.000000e+00> : vector<8xf32>
    %25 = vector.multi_reduction <add>, %24, %cst_13 [1] : vector<8x16xf32> to vector<8xf32>
    %26 = vector.shape_cast %25 : vector<8xf32> to vector<8x1xf32>
    %c0_14 = arith.constant 0 : index
    %c0_15 = arith.constant 0 : index
    %27 = vector.load %arg5[%c0_14, %c0_15] : memref<16x5xf32, #tpu.memory_space<vmem>>, vector<16x5xf32>
    %cst_16 = arith.constant dense<0.000000e+00> : vector<8x5xf32>
    %28 = tpu.matmul %23, %27, %cst_16 {dimension_numbers = #tpu.dot_dimension_numbers<[1], [0], [0], [1], [0, 0, 1, 1], [], []>} : vector<8x16xf32>, vector<16x5xf32>, vector<8x5xf32> -> vector<8x5xf32>
    %cst_17 = arith.constant 0.000000e+00 : f32
    %29 = vector.broadcast %cst_17 : f32 to vector<8x128xf32>
    %c0_18 = arith.constant 0 : index
    %c0_19 = arith.constant 0 : index
    %30 = vector.load %arg6[%c0_18, %c0_19] : memref<8x128xf32, #tpu.memory_space<vmem>>, vector<8x128xf32>
    tpu.vector_store %arg6[%c0_18, %c0_19], %29 {strides = array<i32>} : memref<8x128xf32, #tpu.memory_space<vmem>>, vector<8x128xf32>,
    %c0_20 = arith.constant 0 : index
    %c0_21 = arith.constant 0 : index
    %31 = vector.load %arg6[%c0_20, %c0_21] : memref<8x128xf32, #tpu.memory_space<vmem>>, vector<8x1xf32>
    tpu.vector_store %arg6[%c0_20, %c0_21], %26 {strides = array<i32>} : memref<8x128xf32, #tpu.memory_space<vmem>>, vector<8x1xf32>,
    %c0_22 = arith.constant 0 : index
    %c1 = arith.constant 1 : index
    %32 = vector.load %arg6[%c0_22, %c1] : memref<8x128xf32, #tpu.memory_space<vmem>>, vector<8x5xf32>
    tpu.vector_store %arg6[%c0_22, %c1], %28 {strides = array<i32>} : memref<8x128xf32, #tpu.memory_space<vmem>>, vector<8x5xf32>,
    return
  }
}

module attributes {stable_mosaic.version = 11 : i64} {
  func.func @_posterior_body(%arg0: memref<8x1xf32, #tpu.memory_space<vmem>>, %arg1: memref<8x1xf32, #tpu.memory_space<vmem>>, %arg2: memref<1x16xf32, #tpu.memory_space<vmem>>, %arg3: memref<1x16xf32, #tpu.memory_space<vmem>>, %arg4: memref<16x16xf32, #tpu.memory_space<vmem>>, %arg5: memref<1x16xf32, #tpu.memory_space<vmem>>, %arg6: memref<16x1xf32, #tpu.memory_space<vmem>>, %arg7: memref<8x1xf32, #tpu.memory_space<vmem>>, %arg8: memref<1x2xf32, #tpu.memory_space<smem>>, %arg9: memref<16x16xf32, #tpu.memory_space<vmem>>) attributes {dimension_semantics = [], scalar_prefetch = 0 : i64, scratch_operands = 0 : i64, tpu.core_type = #tpu.core_type<tc>} {
    %c0 = arith.constant 0 : index
    %c0_0 = arith.constant 0 : index
    %0 = vector.load %arg0[%c0, %c0_0] : memref<8x1xf32, #tpu.memory_space<vmem>>, vector<8x1xf32>
    %c0_1 = arith.constant 0 : index
    %c0_2 = arith.constant 0 : index
    %1 = vector.load %arg2[%c0_1, %c0_2] : memref<1x16xf32, #tpu.memory_space<vmem>>, vector<1x16xf32>
    %2 = vector.broadcast %0 : vector<8x1xf32> to vector<8x16xf32>
    %3 = vector.broadcast %1 : vector<1x16xf32> to vector<8x16xf32>
    %4 = arith.subf %2, %3 : vector<8x16xf32>
    %c0_3 = arith.constant 0 : index
    %c0_4 = arith.constant 0 : index
    %5 = vector.load %arg1[%c0_3, %c0_4] : memref<8x1xf32, #tpu.memory_space<vmem>>, vector<8x1xf32>
    %c0_5 = arith.constant 0 : index
    %c0_6 = arith.constant 0 : index
    %6 = vector.load %arg3[%c0_5, %c0_6] : memref<1x16xf32, #tpu.memory_space<vmem>>, vector<1x16xf32>
    %7 = vector.broadcast %5 : vector<8x1xf32> to vector<8x16xf32>
    %8 = vector.broadcast %6 : vector<1x16xf32> to vector<8x16xf32>
    %9 = arith.subf %7, %8 : vector<8x16xf32>
    %10 = arith.mulf %4, %4 : vector<8x16xf32>
    %cst = arith.constant 0.000000e+00 : f32
    %11 = vector.broadcast %cst : f32 to vector<8x16xf32>
    %12 = arith.subf %11, %10 : vector<8x16xf32>
    %cst_7 = arith.constant 8.000000e+00 : f32
    %13 = vector.broadcast %cst_7 : f32 to vector<8x16xf32>
    %14 = arith.divf %12, %13 : vector<8x16xf32>
    %15 = arith.mulf %9, %9 : vector<8x16xf32>
    %cst_8 = arith.constant 1.000000e+01 : f32
    %16 = vector.broadcast %cst_8 : f32 to vector<8x16xf32>
    %17 = arith.divf %15, %16 : vector<8x16xf32>
    %18 = arith.subf %14, %17 : vector<8x16xf32>
    %19 = math.exp %18 : vector<8x16xf32>
    %cst_9 = arith.constant 1.000000e+00 : f32
    %20 = vector.broadcast %cst_9 : f32 to vector<8x16xf32>
    %21 = arith.mulf %20, %19 : vector<8x16xf32>
    %c0_10 = arith.constant 0 : index
    %c0_11 = arith.constant 0 : index
    %22 = vector.load %arg4[%c0_10, %c0_11] : memref<16x16xf32, #tpu.memory_space<vmem>>, vector<16x16xf32>
    %c0_12 = arith.constant 0 : index
    %c0_13 = arith.constant 0 : index
    %23 = vector.load %arg5[%c0_12, %c0_13] : memref<1x16xf32, #tpu.memory_space<vmem>>, vector<1x16xf32>
    %c0_14 = arith.constant 0 : index
    %c0_15 = arith.constant 0 : index
    %24 = vector.load %arg6[%c0_14, %c0_15] : memref<16x1xf32, #tpu.memory_space<vmem>>, vector<16x1xf32>
    %25 = vector.broadcast %23 : vector<1x16xf32> to vector<16x16xf32>
    %26 = vector.broadcast %24 : vector<16x1xf32> to vector<16x16xf32>
    %27 = arith.subf %25, %26 : vector<16x16xf32>
    %cst_16 = arith.constant dense<0.000000e+00> : vector<8x16xf32>
    %28 = tpu.matmul %21, %22, %cst_16 {dimension_numbers = #tpu.dot_dimension_numbers<[1], [0], [0], [1], [0, 0, 1, 1], [], []>} : vector<8x16xf32>, vector<16x16xf32>, vector<8x16xf32> -> vector<8x16xf32>
    %29 = arith.mulf %28, %21 : vector<8x16xf32>
    %cst_17 = arith.constant dense<0.000000e+00> : vector<8xf32>
    %30 = vector.multi_reduction <add>, %29, %cst_17 [1] : vector<8x16xf32> to vector<8xf32>
    %31 = vector.shape_cast %30 : vector<8xf32> to vector<8x1xf32>
    %c0_18 = arith.constant 0 : index
    %c0_19 = arith.constant 0 : index
    %32 = memref.load %arg8[%c0_18, %c0_19] : memref<1x2xf32, #tpu.memory_space<smem>>
    %33 = vector.broadcast %32 : f32 to vector<8x1xf32>
    %34 = arith.subf %33, %31 : vector<8x1xf32>
    %35 = math.absf %34 : vector<8x1xf32>
    %cst_20 = arith.constant 1.000000e-30 : f32
    %36 = vector.broadcast %cst_20 : f32 to vector<8x1xf32>
    %37 = arith.maximumf %35, %36 : vector<8x1xf32>
    %cst_21 = arith.constant dense<0.000000e+00> : vector<8x16xf32>
    %38 = tpu.matmul %28, %27, %cst_21 {dimension_numbers = #tpu.dot_dimension_numbers<[1], [0], [0], [1], [0, 0, 1, 1], [], []>} : vector<8x16xf32>, vector<16x16xf32>, vector<8x16xf32> -> vector<8x16xf32>
    %39 = math.log %37 : vector<8x1xf32>
    %cst_22 = arith.constant 0.000000e+00 : f32
    %40 = vector.broadcast %cst_22 : f32 to vector<8x1xf32>
    %41 = arith.subf %40, %39 : vector<8x1xf32>
    %c0_23 = arith.constant 0 : index
    %c0_24 = arith.constant 0 : index
    %42 = vector.load %arg7[%c0_23, %c0_24] : memref<8x1xf32, #tpu.memory_space<vmem>>, vector<8x1xf32>
    %43 = vector.broadcast %42 : vector<8x1xf32> to vector<8x16xf32>
    %44 = arith.subf %43, %38 : vector<8x16xf32>
    %45 = arith.mulf %44, %44 : vector<8x16xf32>
    %46 = vector.broadcast %37 : vector<8x1xf32> to vector<8x16xf32>
    %47 = arith.divf %45, %46 : vector<8x16xf32>
    %48 = vector.broadcast %41 : vector<8x1xf32> to vector<8x16xf32>
    %49 = arith.subf %48, %47 : vector<8x16xf32>
    %cst_25 = arith.constant 1.83787704 : f32
    %50 = vector.broadcast %cst_25 : f32 to vector<8x16xf32>
    %51 = arith.subf %49, %50 : vector<8x16xf32>
    %cst_26 = arith.constant dense<0.000000e+00> : vector<16xf32>
    %52 = vector.multi_reduction <add>, %51, %cst_26 [0] : vector<8x16xf32> to vector<16xf32>
    %53 = vector.shape_cast %52 : vector<16xf32> to vector<1x16xf32>
    %cst_27 = arith.constant 5.000000e-01 : f32
    %54 = vector.broadcast %cst_27 : f32 to vector<1x16xf32>
    %55 = arith.mulf %54, %53 : vector<1x16xf32>
    %cst_28 = arith.constant dense<0.000000e+00> : vector<16x16xf32>
    %56 = tpu.matmul %22, %27, %cst_28 {dimension_numbers = #tpu.dot_dimension_numbers<[1], [0], [0], [1], [0, 0, 1, 1], [], []>} : vector<16x16xf32>, vector<16x16xf32>, vector<16x16xf32> -> vector<16x16xf32>
    %cst_29 = arith.constant dense<0.000000e+00> : vector<16x16xf32>
    %57 = tpu.matmul %27, %56, %cst_29 {dimension_numbers = #tpu.dot_dimension_numbers<[0], [0], [1], [1], [0, 1, 1, 1], [], []>} : vector<16x16xf32>, vector<16x16xf32>, vector<16x16xf32> -> vector<16x16xf32>
    %c0_30 = arith.constant 0 : index
    %c1 = arith.constant 1 : index
    %58 = memref.load %arg8[%c0_30, %c1] : memref<1x2xf32, #tpu.memory_space<smem>>
    %cst_31 = arith.constant 5.000000e-01 : f32
    %59 = vector.broadcast %cst_31 : f32 to vector<16x16xf32>
    %60 = arith.mulf %59, %57 : vector<16x16xf32>
    %61 = vector.broadcast %58 : f32 to vector<16x16xf32>
    %62 = arith.subf %61, %60 : vector<16x16xf32>
    %63 = vector.broadcast %55 : vector<1x16xf32> to vector<16x16xf32>
    %64 = arith.addf %62, %63 : vector<16x16xf32>
    %c0_32 = arith.constant 0 : index
    %c0_33 = arith.constant 0 : index
    %65 = vector.load %arg9[%c0_32, %c0_33] : memref<16x16xf32, #tpu.memory_space<vmem>>, vector<16x16xf32>
    tpu.vector_store %arg9[%c0_32, %c0_33], %64 {strides = array<i32>} : memref<16x16xf32, #tpu.memory_space<vmem>>, vector<16x16xf32>,
    return
  }
}

</mosaic_0001>

<bundles_post_ra>
// kernel: custom-call.14
= control target key start
LH: loop header
LB: loop body
LE: loop exit
PB: predicated region body
PF: predicated region fallthrough
CT: control target
= control target key end

     0   :  { %v594_v0 = vmov 0.0   ;;  %vm42_vm0 = vcmask 7168   ;;  %vm73_vm1 = vcmask 15368   ;;  %vm90_vm2 = vcmask 1047553   ;;  %s690_s0 = inlined_call_operand.vmem [shape: f32[16,16], index: 0, kind: input, shape index: {}]   ;;  %s691_s1 = inlined_call_operand.vmem [shape: f32[16,16], index: 1, kind: output, shape index: {}]  }
   0x1   :  { %39 = vst [vmem:[#allocation1] sm:$0xff] %v594_v0  ;;  %v608_v4 = vld [vmem:[%s690_s0] sm:$0xff]  ;;  %v616_v16 = vld [vmem:[%s690_s0 + $0x8] sm:$0xff]  ;;  %vm91_vm3 = vmand %vm73_vm1, %vm90_vm2  ;;  %vm108_vm4 = vcmask 23568   ;;  %vm125_vm5 = vcmask 1047554   ;;  %vm143_vm7 = vcmask 31768  }
   0x2   :  { %33 = vst [vmem:[#allocation0] sm:$0xff] %v608_v4  ;;  %35 = vst [vmem:[#allocation0 + $0x8] sm:$0xff] %v616_v16  ;;  %vm160_vm8 = vcmask 1047555   ;;  %vm178_vm10 = vcmask 39968   ;;  %vm195_vm11 = vcmask 1047556   ;;  %vm213_vm13 = vcmask 48168  }
   0x3   :  { %vm126_vm6 = vmand %vm108_vm4, %vm125_vm5  ;;  %vm230_vm14 = vcmask 1047557  }
   0x4   :  { %vm161_vm9 = vmand %vm143_vm7, %vm160_vm8 }
   0x5   :  { %vm196_vm12 = vmand %vm178_vm10, %vm195_vm11 }
   0x6   :  { %vm231_vm15 = vmand %vm213_vm13, %vm230_vm14 }
   0x8   :  { %v43_v1 = vld [vmem:[#allocation1] ss:$0 sm:$0xff] }
   0x9   :  { %v45_v2 = vmul.f32 %v43_v1, %v43_v1  ;;  %v52_v3 = vmul.f32 0.0, %v43_v1  ;;  %v44_v5 = vld [vmem:[#allocation0] ss:$0 sm:$0xff]  ;;  %v77_v17 = vld [vmem:[#allocation0 + $0x1] ss:$0 sm:$0xff] }
   0xa   :  { %v112_v40 = vld [vmem:[#allocation0 + $0x2] ss:$0 sm:$0xff]  ;;  %v147_v58 = vld [vmem:[#allocation0 + $0x3] ss:$0 sm:$0xff] }
   0xb   :  { %46 = vadd.xlane.f32.xlu0 %v45_v2 }
   0xf   :  { %53 = vadd.xlane.f32.xlu0 %v52_v3 }
  0x94   :  { %v47_v6 = vpop.xlane.xlu0 %46 }
  0x95   :  { %v48_v7 = vsub.f32 %v44_v5, %v47_v6 }
  0x97   :  { %562 = vrsqrt.f32 %v48_v7 }
  0x98   :  { %v54_v8 = vpop.xlane.xlu0 %53 }
  0x99   :  { %v55_v9 = vsub.f32 %v608_v4, %v54_v8 }
  0xa4   :  { %v563_v10 = vpop.eup %562 }
  0xa5   :  { %v56_v11 = vmul.f32 %v563_v10, %v55_v9 }
  0xa7   :  { %v57_v12 = vsel %vm42_vm0, %v56_v11, 0.0 }
  0xa8   :  { %59 = vst [vmem:[#allocation1] sm:$0xff] %v57_v12 }
  0xaf   :  { %v75_v13 = vld [vmem:[#allocation1 + $0x1] ss:$0 sm:$0xff] }
  0xb0   :  { %v85_v14 = vmul.f32 %v75_v13, %v57_v12  ;;  %v78_v15 = vmul.f32 %v75_v13, %v75_v13 }
  0xb2   :  { %86 = vadd.xlane.f32.xlu0 %v85_v14  ;;  %79 = vadd.xlane.f32.xlu1 %v78_v15 }
  0xb6   :  { %65 = vadd.xlane.f32.xlu1 %v52_v3 }
 0x13b   :  { %v80_v18 = vpop.xlane.xlu1 %79  ;;  %v87_v24 = vpop.xlane.xlu0 %86 }
 0x13c   :  { %v81_v19 = vsub.f32 %v77_v17, %v80_v18  ;;  %v88_v26 = vsub.f32 %v608_v4, %v87_v24 }
 0x13e   :  { %564 = vrsqrt.f32 %v81_v19 }
 0x13f   :  { %v66_v20 = vpop.xlane.xlu1 %65 }
 0x140   :  { %v67_v21 = vsub.f32 %v616_v16, %v66_v20 }
 0x142   :  { %v68_v22 = vmul.f32 %v563_v10, %v67_v21 }
 0x144   :  { %v69_v23 = vsel %vm42_vm0, %v68_v22, 0.0  ;;  %vm248_vm0 = vcmask 56368  }
 0x145   :  { %v99_v25 = vmul.f32 %v75_v13, %v69_v23  ;;  %v182_v13 = vld [vmem:[#allocation0 + $0x4] ss:$0 sm:$0xff] }
 0x147   :  { %100 = vadd.xlane.f32.xlu1 %v99_v25 }
 0x14b   :  { %v565_v27 = vpop.eup %564 }
 0x14c   :  { %v89_v28 = vmul.f32 %v565_v27, %v88_v26 }
 0x14e   :  { %v92_v29 = vsel %vm91_vm3, %v89_v28, 0.0 }
 0x14f   :  { %v93_v30 = vadd.f32 %v92_v29, %v57_v12 }
 0x151   :  { %94 = vst [vmem:[#allocation1] sm:$0xff] %v93_v30 }
 0x158   :  { %v110_v31 = vld [vmem:[#allocation1 + $0x2] ss:$0 sm:$0xff] }
 0x159   :  { %v113_v32 = vmul.f32 %v110_v31, %v110_v31  ;;  %v120_v33 = vmul.f32 %v110_v31, %v93_v30 }
 0x15b   :  { %114 = vadd.xlane.f32.xlu0 %v113_v32  ;;  %121 = vadd.xlane.f32.xlu1 %v120_v33  ;;  %v217_v32 = vld [vmem:[#allocation0 + $0x5] ss:$0 sm:$0xff] }
 0x1d0   :  { %v101_v34 = vpop.xlane.xlu1 %100 }
 0x1d1   :  { %v102_v35 = vsub.f32 %v616_v16, %v101_v34 }
 0x1d3   :  { %v103_v36 = vmul.f32 %v565_v27, %v102_v35 }
 0x1d5   :  { %v104_v37 = vsel %vm73_vm1, %v103_v36, 0.0  ;;  %vm265_vm1 = vcmask 1047558  }
 0x1d6   :  { %v105_v38 = vadd.f32 %v104_v37, %v69_v23  ;;  %vm266_vm3 = vmand %vm248_vm0, %vm265_vm1 }
 0x1d8   :  { %v134_v39 = vmul.f32 %v110_v31, %v105_v38 }
 0x1da   :  { %135 = vadd.xlane.f32.xlu0 %v134_v39 }
 0x1e4   :  { %v115_v41 = vpop.xlane.xlu0 %114  ;;  %v122_v43 = vpop.xlane.xlu1 %121 }
 0x1e5   :  { %v116_v42 = vsub.f32 %v112_v40, %v115_v41  ;;  %v123_v44 = vsub.f32 %v608_v4, %v122_v43 }
 0x1e7   :  { %566 = vrsqrt.f32 %v116_v42 }
 0x1f4   :  { %v567_v45 = vpop.eup %566 }
 0x1f5   :  { %v124_v46 = vmul.f32 %v567_v45, %v123_v44 }
 0x1f7   :  { %v127_v47 = vsel %vm126_vm6, %v124_v46, 0.0  ;;  %vm318_vm6 = vcmask 72768  }
 0x1f8   :  { %v128_v48 = vadd.f32 %v127_v47, %v93_v30 }
 0x1fa   :  { %129 = vst [vmem:[#allocation1] sm:$0xff] %v128_v48 }
 0x201   :  { %v145_v49 = vld [vmem:[#allocation1 + $0x3] ss:$0 sm:$0xff] }
 0x202   :  { %v155_v50 = vmul.f32 %v145_v49, %v128_v48  ;;  %v148_v51 = vmul.f32 %v145_v49, %v145_v49 }
 0x204   :  { %156 = vadd.xlane.f32.xlu0 %v155_v50  ;;  %149 = vadd.xlane.f32.xlu1 %v148_v51  ;;  %v252_v50 = vld [vmem:[#allocation0 + $0x6] ss:$0 sm:$0xff] }
 0x263   :  { %v136_v52 = vpop.xlane.xlu0 %135 }
 0x264   :  { %v137_v53 = vsub.f32 %v616_v16, %v136_v52 }
 0x266   :  { %v138_v54 = vmul.f32 %v567_v45, %v137_v53 }
 0x268   :  { %v139_v55 = vsel %vm108_vm4, %v138_v54, 0.0  ;;  %vm283_vm4 = vcmask 64568  }
 0x269   :  { %v140_v56 = vadd.f32 %v139_v55, %v105_v38 }
 0x26b   :  { %v169_v57 = vmul.f32 %v145_v49, %v140_v56 }
 0x26d   :  { %170 = vadd.xlane.f32.xlu1 %v169_v57 }
 0x28d   :  { %v150_v59 = vpop.xlane.xlu1 %149  ;;  %v157_v61 = vpop.xlane.xlu0 %156 }
 0x28e   :  { %v151_v60 = vsub.f32 %v147_v58, %v150_v59  ;;  %v158_v62 = vsub.f32 %v608_v4, %v157_v61 }
 0x290   :  { %568 = vrsqrt.f32 %v151_v60 }
 0x29d   :  { %v569_v63 = vpop.eup %568 }
 0x29e   :  { %v159_v0 = vmul.f32 %v569_v63, %v158_v62 }
 0x2a0   :  { %v162_v1 = vsel %vm161_vm9, %v159_v0, 0.0 }
 0x2a1   :  { %v163_v2 = vadd.f32 %v162_v1, %v128_v48 }
 0x2a3   :  { %164 = vst [vmem:[#allocation1] sm:$0xff] %v163_v2 }
 0x2aa   :  { %v180_v3 = vld [vmem:[#allocation1 + $0x4] ss:$0 sm:$0xff] }
 0x2ab   :  { %v190_v5 = vmul.f32 %v180_v3, %v163_v2  ;;  %v183_v6 = vmul.f32 %v180_v3, %v180_v3 }
 0x2ad   :  { %191 = vadd.xlane.f32.xlu1 %v190_v5  ;;  %184 = vadd.xlane.f32.xlu0 %v183_v6 }
 0x2f6   :  { %v171_v7 = vpop.xlane.xlu1 %170 }
 0x2f7   :  { %v172_v8 = vsub.f32 %v616_v16, %v171_v7 }
 0x2f9   :  { %v173_v9 = vmul.f32 %v569_v63, %v172_v8 }
 0x2fb   :  { %v174_v10 = vsel %vm143_vm7, %v173_v9, 0.0  ;;  %vm341_vm7 = vcmask 80968  }
 0x2fc   :  { %v175_v11 = vadd.f32 %v174_v10, %v140_v56  ;;  %vm361_vm9 = vmand %vm341_vm7, %vm90_vm2 }
 0x2fe   :  { %v204_v12 = vmul.f32 %v180_v3, %v175_v11  ;;  %v287_v3 = vld [vmem:[#allocation0 + $0x7] ss:$0 sm:$0xff] }
 0x300   :  { %205 = vadd.xlane.f32.xlu0 %v204_v12 }
 0x336   :  { %v185_v14 = vpop.xlane.xlu0 %184  ;;  %v192_v17 = vpop.xlane.xlu1 %191 }
 0x337   :  { %v186_v15 = vsub.f32 %v182_v13, %v185_v14  ;;  %v193_v18 = vsub.f32 %v608_v4, %v192_v17  ;;  %v322_v17 = vld [vmem:[#allocation0 + $0x8] ss:$0 sm:$0xff] }
 0x339   :  { %570 = vrsqrt.f32 %v186_v15 }
 0x346   :  { %v571_v19 = vpop.eup %570 }
 0x347   :  { %v194_v20 = vmul.f32 %v571_v19, %v193_v18 }
 0x349   :  { %v197_v21 = vsel %vm196_vm12, %v194_v20, 0.0  ;;  %vm391_vm12 = vcmask 97368  }
 0x34a   :  { %v198_v22 = vadd.f32 %v197_v21, %v163_v2 }
 0x34c   :  { %199 = vst [vmem:[#allocation1] sm:$0xff] %v198_v22 }
 0x353   :  { %v215_v23 = vld [vmem:[#allocation1 + $0x5] ss:$0 sm:$0xff] }
 0x354   :  { %v225_v24 = vmul.f32 %v215_v23, %v198_v22  ;;  %v218_v25 = vmul.f32 %v215_v23, %v215_v23 }
 0x356   :  { %226 = vadd.xlane.f32.xlu0 %v225_v24  ;;  %219 = vadd.xlane.f32.xlu1 %v218_v25 }
 0x389   :  { %v206_v26 = vpop.xlane.xlu0 %205 }
 0x38a   :  { %v207_v27 = vsub.f32 %v616_v16, %v206_v26 }
 0x38c   :  { %v208_v28 = vmul.f32 %v571_v19, %v207_v27 }
 0x38e   :  { %v209_v29 = vsel %vm178_vm10, %v208_v28, 0.0  ;;  %vm366_vm10 = vcmask 89168  }
 0x38f   :  { %v210_v30 = vadd.f32 %v209_v29, %v175_v11  ;;  %v345_v29 = vld [vmem:[#allocation0 + $0x9] ss:$0 sm:$0xff]  ;;  %vm386_vm2 = vmand %vm366_vm10, %vm125_vm5 }
 0x390   :  { %vm411_vm5 = vmand %vm391_vm12, %vm160_vm8 }
 0x391   :  { %v239_v31 = vmul.f32 %v215_v23, %v210_v30 }
 0x393   :  { %240 = vadd.xlane.f32.xlu1 %v239_v31 }
 0x3df   :  { %v220_v33 = vpop.xlane.xlu1 %219  ;;  %v227_v35 = vpop.xlane.xlu0 %226 }
 0x3e0   :  { %v221_v34 = vsub.f32 %v217_v32, %v220_v33  ;;  %v228_v36 = vsub.f32 %v608_v4, %v227_v35 }
 0x3e2   :  { %572 = vrsqrt.f32 %v221_v34 }
 0x3ef   :  { %v573_v37 = vpop.eup %572 }
 0x3f0   :  { %v229_v38 = vmul.f32 %v573_v37, %v228_v36 }
 0x3f2   :  { %v232_v39 = vsel %vm231_vm15, %v229_v38, 0.0  ;;  %vm441_vm15 = vcmask 113768  }
 0x3f3   :  { %v233_v40 = vadd.f32 %v232_v39, %v198_v22 }
 0x3f5   :  { %234 = vst [vmem:[#allocation1] sm:$0xff] %v233_v40 }
 0x3fc   :  { %v250_v41 = vld [vmem:[#allocation1 + $0x6] ss:$0 sm:$0xff] }
 0x3fd   :  { %v260_v42 = vmul.f32 %v250_v41, %v233_v40  ;;  %v253_v43 = vmul.f32 %v250_v41, %v250_v41 }
 0x3ff   :  { %261 = vadd.xlane.f32.xlu1 %v260_v42  ;;  %254 = vadd.xlane.f32.xlu0 %v253_v43 }
 0x41c   :  { %v241_v44 = vpop.xlane.xlu1 %240 }
 0x41d   :  { %v242_v45 = vsub.f32 %v616_v16, %v241_v44 }
 0x41f   :  { %v243_v46 = vmul.f32 %v573_v37, %v242_v45 }
 0x421   :  { %v244_v47 = vsel %vm213_vm13, %v243_v46, 0.0  ;;  %vm416_vm13 = vcmask 105568  }
 0x422   :  { %v245_v48 = vadd.f32 %v244_v47, %v210_v30  ;;  %vm436_vm8 = vmand %vm416_vm13, %vm195_vm11 }
 0x423   :  { %vm461_vm11 = vmand %vm441_vm15, %vm230_vm14 }
 0x424   :  { %v274_v49 = vmul.f32 %v250_v41, %v245_v48  ;;  %v370_v41 = vld [vmem:[#allocation0 + $0xa] ss:$0 sm:$0xff] }
 0x426   :  { %275 = vadd.xlane.f32.xlu0 %v274_v49 }
 0x488   :  { %v255_v51 = vpop.xlane.xlu0 %254  ;;  %v262_v53 = vpop.xlane.xlu1 %261 }
 0x489   :  { %v256_v52 = vsub.f32 %v252_v50, %v255_v51  ;;  %v263_v54 = vsub.f32 %v608_v4, %v262_v53  ;;  %v395_v53 = vld [vmem:[#allocation0 + $0xb] ss:$0 sm:$0xff] }
 0x48b   :  { %574 = vrsqrt.f32 %v256_v52 }
 0x498   :  { %v575_v55 = vpop.eup %574 }
 0x499   :  { %v264_v56 = vmul.f32 %v575_v55, %v263_v54 }
 0x49b   :  { %v267_v57 = vsel %vm266_vm3, %v264_v56, 0.0  ;;  %vm466_vm3 = vcmask 121968  }
 0x49c   :  { %v648_v58 = vadd.f32 %v267_v57, %v233_v40 }
 0x49e   :  { %269 = vst [vmem:[#allocation1] sm:$0xff] %v648_v58 }
 0x4a5   :  { %v651_v59 = vld [vmem:[#allocation1 + $0x7] ss:$0 sm:$0xff] }
 0x4a6   :  { %v288_v60 = vmul.f32 %v651_v59, %v651_v59 }
 0x4a8   :  { %289 = vadd.xlane.f32.xlu1 %v288_v60 }
 0x4af   :  { %v276_v61 = vpop.xlane.xlu0 %275 }
 0x4b0   :  { %v277_v62 = vsub.f32 %v616_v16, %v276_v61 }
 0x4b2   :  { %v278_v63 = vmul.f32 %v575_v55, %v277_v62 }
 0x4b4   :  { %v279_v0 = vsel %vm248_vm0, %v278_v63, 0.0  ;;  %vm300_vm0 = vcmask 1047559  }
 0x4b5   :  { %v280_v1 = vadd.f32 %v279_v0, %v245_v48  ;;  %vm301_vm14 = vmand %vm283_vm4, %vm300_vm0 }
 0x4b7   :  { %v309_v2 = vmul.f32 %v651_v59, %v280_v1 }
 0x4b9   :  { %310 = vadd.xlane.f32.xlu0 %v309_v2 }
 0x531   :  { %v290_v5 = vpop.xlane.xlu1 %289 }
 0x532   :  { %v291_v6 = vsub.f32 %v287_v3, %v290_v5  ;;  %v420_v3 = vld [vmem:[#allocation0 + $0xc] ss:$0 sm:$0xff] }
 0x534   :  { %576 = vrsqrt.f32 %v291_v6 }
 0x541   :  { %v658_v9 = vpop.eup %576 }
 0x542   :  { %v311_v7 = vpop.xlane.xlu0 %310 }
 0x543   :  { %v312_v8 = vsub.f32 %v616_v16, %v311_v7 }
 0x545   :  { %v313_v10 = vmul.f32 %v658_v9, %v312_v8 }
 0x547   :  { %v314_v11 = vsel %vm283_vm4, %v313_v10, 0.0  ;;  %vm491_vm4 = vcmask 130168  }
 0x548   :  { %v315_v12 = vadd.f32 %v314_v11, %v280_v1 }
 0x54a   :  { %317 = vst [vmem:[#allocation1 + $0x8] sm:$0xff] %v315_v12 }
 0x551   :  { %v320_v13 = vld [vmem:[#allocation1 + $0x8] ss:$0 sm:$0xff] }
 0x552   :  { %v332_v14 = vmul.f32 %v320_v13, %v315_v12  ;;  %v323_v15 = vmul.f32 %v320_v13, %v320_v13 }
 0x554   :  { %333 = vadd.xlane.f32.xlu0 %v332_v14  ;;  %324 = vadd.xlane.f32.xlu1 %v323_v15 }
 0x5dd   :  { %v325_v18 = vpop.xlane.xlu1 %324  ;;  %v334_v20 = vpop.xlane.xlu0 %333 }
 0x5de   :  { %v326_v19 = vsub.f32 %v322_v17, %v325_v18  ;;  %v335_v21 = vsub.f32 %v616_v16, %v334_v20  ;;  %v445_v18 = vld [vmem:[#allocation0 + $0xd] ss:$0 sm:$0xff] }
 0x5e0   :  { %578 = vrsqrt.f32 %v326_v19 }
 0x5ed   :  { %v579_v22 = vpop.eup %578 }
 0x5ee   :  { %v336_v23 = vmul.f32 %v579_v22, %v335_v21 }
 0x5f0   :  { %v337_v24 = vsel %vm318_vm6, %v336_v23, 0.0  ;;  %vm486_vm6 = vmand %vm466_vm3, %vm265_vm1 }
 0x5f1   :  { %v338_v25 = vadd.f32 %v337_v24, %v315_v12  ;;  %vm511_vm1 = vmand %vm491_vm4, %vm300_vm0 }
 0x5f3   :  { %340 = vst [vmem:[#allocation1 + $0x8] sm:$0xff] %v338_v25 }
 0x5fa   :  { %v343_v26 = vld [vmem:[#allocation1 + $0x9] ss:$0 sm:$0xff] }
 0x5fb   :  { %v355_v27 = vmul.f32 %v343_v26, %v338_v25  ;;  %v346_v28 = vmul.f32 %v343_v26, %v343_v26 }
 0x5fd   :  { %356 = vadd.xlane.f32.xlu0 %v355_v27  ;;  %347 = vadd.xlane.f32.xlu1 %v346_v28 }
 0x686   :  { %v348_v30 = vpop.xlane.xlu1 %347  ;;  %v357_v32 = vpop.xlane.xlu0 %356 }
 0x687   :  { %v349_v31 = vsub.f32 %v345_v29, %v348_v30  ;;  %v358_v33 = vsub.f32 %v616_v16, %v357_v32  ;;  %v295_v30 = vmul.f32 %v651_v59, %v648_v58 }
 0x689   :  { %580 = vrsqrt.f32 %v349_v31  ;;  %v470_v31 = vld [vmem:[#allocation0 + $0xe] ss:$0 sm:$0xff] }
 0x696   :  { %v581_v34 = vpop.eup %580 }
 0x697   :  { %v359_v35 = vmul.f32 %v581_v34, %v358_v33 }
 0x699   :  { %v362_v36 = vsel %vm361_vm9, %v359_v35, 0.0 }
 0x69a   :  { %v363_v37 = vadd.f32 %v362_v36, %v338_v25 }
 0x69c   :  { %365 = vst [vmem:[#allocation1 + $0x8] sm:$0xff] %v363_v37 }
 0x6a3   :  { %v368_v38 = vld [vmem:[#allocation1 + $0xa] ss:$0 sm:$0xff] }
 0x6a4   :  { %v380_v39 = vmul.f32 %v368_v38, %v363_v37  ;;  %v371_v40 = vmul.f32 %v368_v38, %v368_v38 }
 0x6a6   :  { %381 = vadd.xlane.f32.xlu0 %v380_v39  ;;  %372 = vadd.xlane.f32.xlu1 %v371_v40 }
 0x72f   :  { %v373_v42 = vpop.xlane.xlu1 %372  ;;  %v382_v44 = vpop.xlane.xlu0 %381 }
 0x730   :  { %v374_v43 = vsub.f32 %v370_v41, %v373_v42  ;;  %v383_v45 = vsub.f32 %v616_v16, %v382_v44 }
 0x732   :  { %582 = vrsqrt.f32 %v374_v43 }
 0x73f   :  { %v583_v46 = vpop.eup %582 }
 0x740   :  { %v384_v47 = vmul.f32 %v583_v46, %v383_v45 }
 0x742   :  { %v387_v48 = vsel %vm386_vm2, %v384_v47, 0.0 }
 0x743   :  { %v388_v49 = vadd.f32 %v387_v48, %v363_v37 }
 0x745   :  { %390 = vst [vmem:[#allocation1 + $0x8] sm:$0xff] %v388_v49 }
 0x74c   :  { %v393_v50 = vld [vmem:[#allocation1 + $0xb] ss:$0 sm:$0xff] }
 0x74d   :  { %v405_v51 = vmul.f32 %v393_v50, %v388_v49  ;;  %v396_v52 = vmul.f32 %v393_v50, %v393_v50 }
 0x74f   :  { %406 = vadd.xlane.f32.xlu0 %v405_v51  ;;  %397 = vadd.xlane.f32.xlu1 %v396_v52 }
 0x7d8   :  { %v398_v54 = vpop.xlane.xlu1 %397  ;;  %v407_v56 = vpop.xlane.xlu0 %406 }
 0x7d9   :  { %v399_v55 = vsub.f32 %v395_v53, %v398_v54  ;;  %v408_v57 = vsub.f32 %v616_v16, %v407_v56 }
 0x7db   :  { %584 = vrsqrt.f32 %v399_v55 }
 0x7e8   :  { %v585_v60 = vpop.eup %584 }
 0x7e9   :  { %v409_v61 = vmul.f32 %v585_v60, %v408_v57 }
 0x7eb   :  { %v412_v62 = vsel %vm411_vm5, %v409_v61, 0.0 }
 0x7ec   :  { %v413_v63 = vadd.f32 %v412_v62, %v388_v49 }
 0x7ee   :  { %415 = vst [vmem:[#allocation1 + $0x8] sm:$0xff] %v413_v63 }
 0x7f5   :  { %v418_v0 = vld [vmem:[#allocation1 + $0xc] ss:$0 sm:$0xff] }
 0x7f6   :  { %v430_v1 = vmul.f32 %v418_v0, %v413_v63  ;;  %v421_v2 = vmul.f32 %v418_v0, %v418_v0 }
 0x7f8   :  { %431 = vadd.xlane.f32.xlu0 %v430_v1  ;;  %422 = vadd.xlane.f32.xlu1 %v421_v2 }
 0x881   :  { %v423_v5 = vpop.xlane.xlu1 %422  ;;  %v432_v7 = vpop.xlane.xlu0 %431 }
 0x882   :  { %v424_v6 = vsub.f32 %v420_v3, %v423_v5  ;;  %v433_v8 = vsub.f32 %v616_v16, %v432_v7 }
 0x884   :  { %586 = vrsqrt.f32 %v424_v6 }
 0x891   :  { %v587_v10 = vpop.eup %586 }
 0x892   :  { %v434_v11 = vmul.f32 %v587_v10, %v433_v8 }
 0x894   :  { %v437_v12 = vsel %vm436_vm8, %v434_v11, 0.0 }
 0x895   :  { %v438_v13 = vadd.f32 %v437_v12, %v413_v63 }
 0x897   :  { %440 = vst [vmem:[#allocation1 + $0x8] sm:$0xff] %v438_v13 }
 0x89e   :  { %v443_v14 = vld [vmem:[#allocation1 + $0xd] ss:$0 sm:$0xff] }
 0x89f   :  { %v455_v15 = vmul.f32 %v443_v14, %v438_v13  ;;  %v446_v17 = vmul.f32 %v443_v14, %v443_v14 }
 0x8a1   :  { %456 = vadd.xlane.f32.xlu0 %v455_v15  ;;  %447 = vadd.xlane.f32.xlu1 %v446_v17 }
 0x92a   :  { %v448_v19 = vpop.xlane.xlu1 %447  ;;  %v457_v21 = vpop.xlane.xlu0 %456 }
 0x92b   :  { %v449_v20 = vsub.f32 %v445_v18, %v448_v19  ;;  %v458_v22 = vsub.f32 %v616_v16, %v457_v21 }
 0x92d   :  { %588 = vrsqrt.f32 %v449_v20 }
 0x93a   :  { %v589_v23 = vpop.eup %588 }
 0x93b   :  { %v459_v24 = vmul.f32 %v589_v23, %v458_v22 }
 0x93d   :  { %v462_v25 = vsel %vm461_vm11, %v459_v24, 0.0 }
 0x93e   :  { %v463_v26 = vadd.f32 %v462_v25, %v438_v13 }
 0x940   :  { %465 = vst [vmem:[#allocation1 + $0x8] sm:$0xff] %v463_v26 }
 0x947   :  { %v468_v27 = vld [vmem:[#allocation1 + $0xe] ss:$0 sm:$0xff] }
 0x948   :  { %v480_v28 = vmul.f32 %v468_v27, %v463_v26  ;;  %v471_v29 = vmul.f32 %v468_v27, %v468_v27 }
 0x94a   :  { %481 = vadd.xlane.f32.xlu0 %v480_v28  ;;  %472 = vadd.xlane.f32.xlu1 %v471_v29 }
 0x94e   :  { %296 = vadd.xlane.f32.xlu0 %v295_v30 }
 0x9d3   :  { %v482_v32 = vpop.xlane.xlu0 %481  ;;  %v473_v33 = vpop.xlane.xlu1 %472 }
 0x9d4   :  { %v474_v34 = vsub.f32 %v470_v31, %v473_v33  ;;  %v483_v59 = vsub.f32 %v616_v16, %v482_v32 }
 0x9d6   :  { %590 = vrsqrt.f32 %v474_v34 }
 0x9d7   :  { %v297_v35 = vpop.xlane.xlu0 %296 }
 0x9d8   :  { %v298_v36 = vsub.f32 %v608_v4, %v297_v35 }
 0x9da   :  { %v299_v37 = vmul.f32 %v658_v9, %v298_v36 }
 0x9dc   :  { %v302_v38 = vsel %vm301_vm14, %v299_v37, 0.0 }
 0x9dd   :  { %v303_v39 = vadd.f32 %v302_v38, %v648_v58  ;;  %v495_v58 = vld [vmem:[#allocation0 + $0xf] ss:$0 sm:$0xff] }
 0x9df   :  { %304 = vst [vmem:[#allocation1] sm:$0xff] %v303_v39  ;;  %547 = vst [vmem:[%s691_s1] sm:$0xff] %v303_v39 }
 0x9e3   :  { %v591_v40 = vpop.eup %590 }
 0x9e4   :  { %v484_v4 = vmul.f32 %v591_v40, %v483_v59 }
 0x9e6   :  { %v487_v41 = vsel %vm486_vm6, %v484_v4, 0.0 }
 0x9e7   :  { %v488_v42 = vadd.f32 %v487_v41, %v463_v26 }
 0x9e9   :  { %490 = vst [vmem:[#allocation1 + $0x8] sm:$0xff] %v488_v42 }
 0x9f0   :  { %v493_v43 = vld [vmem:[#allocation1 + $0xf] ss:$0 sm:$0xff] }
 0x9f1   :  { %v496_v9 = vmul.f32 %v493_v43, %v493_v43  ;;  %v505_v44 = vmul.f32 %v493_v43, %v488_v42 }
 0x9f3   :  { %497 = vadd.xlane.f32.xlu1 %v496_v9 }
 0x9f7   :  { %506 = vadd.xlane.f32.xlu1 %v505_v44 }
 0xa7c   :  { %v498_v45 = vpop.xlane.xlu1 %497 }
 0xa7d   :  { %v499_v46 = vsub.f32 %v495_v58, %v498_v45 }
 0xa7f   :  { %592 = vrsqrt.f32 %v499_v46 }
 0xa80   :  { %v507_v47 = vpop.xlane.xlu1 %506 }
 0xa81   :  { %v508_v48 = vsub.f32 %v616_v16, %v507_v47 }
 0xa8c   :  { %v593_v49 = vpop.eup %592 }
 0xa8d   :  { %v509_v50 = vmul.f32 %v593_v49, %v508_v48 }
 0xa8f   :  { %v512_v51 = vsel %vm511_vm1, %v509_v50, 0.0 }
 0xa90   :  { %v513_v52 = vadd.f32 %v512_v51, %v488_v42 }
 0xa92   :  { %515 = vst [vmem:[#allocation1 + $0x8] sm:$0xff] %v513_v52  ;;  %549 = vst [vmem:[%s691_s1 + $0x8] sm:$0xff] %v513_v52 }

// kernel: custom-call.22
= control target key start
LH: loop header
LB: loop body
LE: loop exit
PB: predicated region body
PF: predicated region fallthrough
CT: control target
= control target key end

     0   :  { %v39_v0 = vlaneseq  ;;  %v334_v9 = vmov -1.0   ;;  %v335_v53 = vmov 0.0   ;;  %s403_s0 = inlined_call_operand.vmem [shape: f32[1,16,16], index: 0, kind: input, shape index: {}]   ;;  %s404_s1 = inlined_call_operand.vmem [shape: f32[1,16,16], index: 1, kind: output, shape index: {}]  }
   0x1   :  { %v32_v1 = vld [vmem:[%s403_s0] sm:$0xff]  ;;  %v34_v36 = vld [vmem:[%s403_s0 + $0x8] sm:$0xff] }
   0x2   :  { %v349_v2 = vand.u32 127, %v39_v0  ;;  %v43_v3 = vshrl.u32 %v39_v0, 7 }
   0x4   :  { %vm45_vm0 = vcmp.eq.s32.totalorder %v43_v3, %v349_v2  ;;  %vm41_vm1 = vcmp.lt.s32.totalorder %v349_v2, 16  ;;  %vm50_vm2 = vcmp.ge.s32.totalorder %v43_v3, %v349_v2  ;;  %vm80_vm4 = vcmp.eq.s32.totalorder %v349_v2, 0 }
   0x5   :  { %v47_v4 = vsel %vm45_vm0, %v32_v1, 0.0  ;;  %vm51_vm3 = vmand %vm50_vm2, %vm41_vm1  ;;  %vm77_vm5 = vcmp.eq.s32.totalorder %v349_v2, %v43_v3  ;;  %v81_v10 = vsel %vm80_vm4, 1.0, %v334_v9  ;;  %vm95_vm6 = vcmp.eq.s32.totalorder %v349_v2, 1 }
   0x6   :  { %48 = vadd.xlane.f32.xlu0 %v47_v4  ;;  %v52_v6 = vsel %vm51_vm3, %v32_v1, 0.0  ;;  %v82_v11 = vsel %vm77_vm5, %v81_v10, 0.0  ;;  %vm105_vm7 = vcmp.eq.s32.totalorder %v349_v2, 2  ;;  %vm115_vm8 = vcmp.eq.s32.totalorder %v349_v2, 3 }
   0x7   :  { %vm125_vm9 = vcmp.eq.s32.totalorder %v349_v2, 4  ;;  %v60_v31 = vadd.s32 8, %v43_v3  ;;  %vm135_vm11 = vcmp.eq.s32.totalorder %v349_v2, 5  ;;  %vm145_vm14 = vcmp.eq.s32.totalorder %v349_v2, 6 }
   0x8   :  { %vm155_vm0 = vcmp.eq.s32.totalorder %v349_v2, 7  ;;  %vm179_vm2 = vcmp.eq.s32.totalorder %v349_v2, 9  ;;  %vm193_vm3 = vcmp.eq.s32.totalorder %v349_v2, 10  ;;  %vm207_vm4 = vcmp.eq.s32.totalorder %v349_v2, 11 }
   0x9   :  { %vm61_vm10 = vcmp.eq.s32.totalorder %v60_v31, %v349_v2  ;;  %vm66_vm12 = vcmp.ge.s32.totalorder %v60_v31, %v349_v2  ;;  %vm88_vm15 = vcmp.eq.s32.totalorder %v349_v2, %v60_v31  ;;  %vm221_vm5 = vcmp.eq.s32.totalorder %v349_v2, 12 }
   0xa   :  { %v63_v37 = vsel %vm61_vm10, %v34_v36, 0.0  ;;  %vm67_vm13 = vmand %vm66_vm12, %vm41_vm1  ;;  %v89_v54 = vsel %vm88_vm15, -1.0, %v335_v53  ;;  %vm165_vm1 = vcmp.eq.s32.totalorder %v349_v2, 8 }
   0xb   :  { %v68_v44 = vsel %vm67_vm13, %v34_v36, 0.0 }
  0x8f   :  { %v352_v5 = vpop.xlane.xlu0 %48 }
  0x90   :  { %330 = vrcp.f32 %v352_v5  ;;  %vm274_vm10 = vweird.f32 %v352_v5 }
  0x9d   :  { %v359_v7 = vpop.eup %330 }
  0x9e   :  { %v54_v8 = vmul.f32 %v359_v7, %v52_v6 }
  0xa0   :  { %55 = vst [vmem:[#allocation2] sm:$0xff] %v54_v8 }
  0xa7   :  { %v91_v12 = vld [vmem:[#allocation2 + $0x1] ss:$0 sm:$0xff]  ;;  %v101_v15 = vld [vmem:[#allocation2 + $0x2] ss:$0 sm:$0xff]  ;;  %v111_v20 = vld [vmem:[#allocation2 + $0x3] ss:$0 sm:$0xff] }
  0xa8   :  { %v92_v13 = vxor.u32 2147483648, %v91_v12  ;;  %v102_v17 = vxor.u32 2147483648, %v101_v15  ;;  %v112_v22 = vxor.u32 2147483648, %v111_v20  ;;  %v121_v25 = vld [vmem:[#allocation2 + $0x4] ss:$0 sm:$0xff] }
  0xa9   :  { %v122_v27 = vxor.u32 2147483648, %v121_v25  ;;  %v131_v30 = vld [vmem:[#allocation2 + $0x5] ss:$0 sm:$0xff]  ;;  %v141_v38 = vld [vmem:[#allocation2 + $0x6] ss:$0 sm:$0xff] }
  0xaa   :  { %v96_v14 = vmul.f32 %v92_v13, %v82_v11  ;;  %v132_v33 = vxor.u32 2147483648, %v131_v30  ;;  %v142_v40 = vxor.u32 2147483648, %v141_v38  ;;  %v151_v47 = vld [vmem:[#allocation2 + $0x7] ss:$0 sm:$0xff] }
  0xab   :  { %v152_v50 = vxor.u32 2147483648, %v151_v47 }
  0xac   :  { %97 = vadd.xlane.f32.xlu0 %v96_v14 }
 0x135   :  { %v98_v16 = vpop.xlane.xlu0 %97 }
 0x136   :  { %v99_v18 = vsel %vm95_vm6, %v98_v16, %v82_v11  ;;  %vm235_vm6 = vcmp.eq.s32.totalorder %v349_v2, 13 }
 0x137   :  { %v106_v19 = vmul.f32 %v102_v17, %v99_v18 }
 0x139   :  { %107 = vadd.xlane.f32.xlu1 %v106_v19 }
 0x1c2   :  { %v108_v21 = vpop.xlane.xlu1 %107 }
 0x1c3   :  { %v109_v23 = vsel %vm105_vm7, %v108_v21, %v99_v18  ;;  %vm249_vm7 = vcmp.eq.s32.totalorder %v349_v2, 14 }
 0x1c4   :  { %v116_v24 = vmul.f32 %v112_v22, %v109_v23 }
 0x1c6   :  { %117 = vadd.xlane.f32.xlu1 %v116_v24 }
 0x24f   :  { %v118_v26 = vpop.xlane.xlu1 %117 }
 0x250   :  { %v119_v28 = vsel %vm115_vm8, %v118_v26, %v109_v23  ;;  %vm263_vm8 = vcmp.eq.s32.totalorder %v349_v2, 15 }
 0x251   :  { %v126_v29 = vmul.f32 %v122_v27, %v119_v28 }
 0x253   :  { %127 = vadd.xlane.f32.xlu0 %v126_v29 }
 0x2dc   :  { %v128_v32 = vpop.xlane.xlu0 %127 }
 0x2dd   :  { %v129_v34 = vsel %vm125_vm9, %v128_v32, %v119_v28 }
 0x2de   :  { %v136_v35 = vmul.f32 %v132_v33, %v129_v34 }
 0x2e0   :  { %137 = vadd.xlane.f32.xlu1 %v136_v35 }
 0x2e4   :  { %64 = vadd.xlane.f32.xlu1 %v63_v37 }
 0x369   :  { %v138_v39 = vpop.xlane.xlu1 %137 }
 0x36a   :  { %v139_v41 = vsel %vm135_vm11, %v138_v39, %v129_v34 }
 0x36b   :  { %v146_v42 = vmul.f32 %v142_v40, %v139_v41 }
 0x36d   :  { %147 = vadd.xlane.f32.xlu0 %v146_v42  ;;  %v373_v43 = vpop.xlane.xlu1 %64 }
 0x36e   :  { %332 = vrcp.f32 %v373_v43  ;;  %vm279_vm9 = vweird.f32 %v373_v43 }
 0x37b   :  { %v379_v45 = vpop.eup %332 }
 0x37c   :  { %v70_v46 = vmul.f32 %v379_v45, %v68_v44 }
 0x37e   :  { %71 = vst [vmem:[#allocation2 + $0x8] sm:$0xff] %v70_v46 }
 0x385   :  { %v161_v48 = vld [vmem:[#allocation2 + $0x8] ss:$0 sm:$0xff]  ;;  %v175_v59 = vld [vmem:[#allocation2 + $0x9] ss:$0 sm:$0xff]  ;;  %v189_v4 = vld [vmem:[#allocation2 + $0xa] ss:$0 sm:$0xff] }
 0x386   :  { %v162_v51 = vxor.u32 2147483648, %v161_v48  ;;  %v176_v62 = vxor.u32 2147483648, %v175_v59  ;;  %v190_v9 = vxor.u32 2147483648, %v189_v4  ;;  %v203_v14 = vld [vmem:[#allocation2 + $0xb] ss:$0 sm:$0xff] }
 0x387   :  { %v204_v17 = vxor.u32 2147483648, %v203_v14  ;;  %v217_v22 = vld [vmem:[#allocation2 + $0xc] ss:$0 sm:$0xff]  ;;  %v231_v30 = vld [vmem:[#allocation2 + $0xd] ss:$0 sm:$0xff] }
 0x388   :  { %v170_v56 = vmul.f32 %v162_v51, %v89_v54  ;;  %v218_v25 = vxor.u32 2147483648, %v217_v22  ;;  %v232_v33 = vxor.u32 2147483648, %v231_v30  ;;  %v245_v38 = vld [vmem:[#allocation2 + $0xe] ss:$0 sm:$0xff]  ;;  %v259_v48 = vld [vmem:[#allocation2 + $0xf] ss:$0 sm:$0xff] }
 0x3f6   :  { %v148_v49 = vpop.xlane.xlu0 %147 }
 0x3f7   :  { %v149_v52 = vsel %vm145_vm14, %v148_v49, %v139_v41  ;;  %v246_v41 = vxor.u32 2147483648, %v245_v38 }
 0x3f8   :  { %v156_v55 = vmul.f32 %v152_v50, %v149_v52 }
 0x3fa   :  { %157 = vadd.xlane.f32.xlu0 %v156_v55 }
 0x3fe   :  { %171 = vadd.xlane.f32.xlu0 %v170_v56 }
 0x483   :  { %v158_v57 = vpop.xlane.xlu0 %157 }
 0x484   :  { %v159_v58 = vsel %vm155_vm0, %v158_v57, %v149_v52 }
 0x485   :  { %v166_v60 = vmul.f32 %v162_v51, %v159_v58  ;;  %v260_v51 = vxor.u32 2147483648, %v259_v48 }
 0x487   :  { %v172_v61 = vpop.xlane.xlu0 %171  ;;  %167 = vadd.xlane.f32.xlu1 %v166_v60 }
 0x488   :  { %v173_v63 = vsel %vm165_vm1, %v172_v61, %v89_v54 }
 0x489   :  { %v184_v0 = vmul.f32 %v176_v62, %v173_v63 }
 0x48b   :  { %185 = vadd.xlane.f32.xlu0 %v184_v0 }
 0x510   :  { %v168_v1 = vpop.xlane.xlu1 %167 }
 0x511   :  { %v169_v3 = vsel %vm165_vm1, %v168_v1, %v159_v58 }
 0x512   :  { %v180_v6 = vmul.f32 %v176_v62, %v169_v3 }
 0x514   :  { %v186_v8 = vpop.xlane.xlu0 %185  ;;  %181 = vadd.xlane.f32.xlu1 %v180_v6 }
 0x515   :  { %v187_v10 = vsel %vm179_vm2, %v186_v8, %v173_v63 }
 0x516   :  { %v198_v11 = vmul.f32 %v190_v9, %v187_v10 }
 0x518   :  { %199 = vadd.xlane.f32.xlu0 %v198_v11 }
 0x59d   :  { %v182_v12 = vpop.xlane.xlu1 %181 }
 0x59e   :  { %v183_v13 = vsel %vm179_vm2, %v182_v12, %v169_v3 }
 0x59f   :  { %v194_v15 = vmul.f32 %v190_v9, %v183_v13 }
 0x5a1   :  { %v200_v16 = vpop.xlane.xlu0 %199  ;;  %195 = vadd.xlane.f32.xlu1 %v194_v15 }
 0x5a2   :  { %v201_v18 = vsel %vm193_vm3, %v200_v16, %v187_v10 }
 0x5a3   :  { %v212_v19 = vmul.f32 %v204_v17, %v201_v18 }
 0x5a5   :  { %213 = vadd.xlane.f32.xlu0 %v212_v19 }
 0x62a   :  { %v196_v20 = vpop.xlane.xlu1 %195 }
 0x62b   :  { %v197_v21 = vsel %vm193_vm3, %v196_v20, %v183_v13 }
 0x62c   :  { %v208_v23 = vmul.f32 %v204_v17, %v197_v21 }
 0x62e   :  { %v214_v24 = vpop.xlane.xlu0 %213  ;;  %209 = vadd.xlane.f32.xlu1 %v208_v23 }
 0x62f   :  { %v215_v26 = vsel %vm207_vm4, %v214_v24, %v201_v18 }
 0x630   :  { %v226_v27 = vmul.f32 %v218_v25, %v215_v26 }
 0x632   :  { %227 = vadd.xlane.f32.xlu0 %v226_v27 }
 0x6b7   :  { %v210_v28 = vpop.xlane.xlu1 %209 }
 0x6b8   :  { %v211_v29 = vsel %vm207_vm4, %v210_v28, %v197_v21 }
 0x6b9   :  { %v222_v31 = vmul.f32 %v218_v25, %v211_v29 }
 0x6bb   :  { %v228_v32 = vpop.xlane.xlu0 %227  ;;  %223 = vadd.xlane.f32.xlu1 %v222_v31 }
 0x6bc   :  { %v229_v34 = vsel %vm221_vm5, %v228_v32, %v215_v26 }
 0x6bd   :  { %v240_v35 = vmul.f32 %v232_v33, %v229_v34 }
 0x6bf   :  { %241 = vadd.xlane.f32.xlu0 %v240_v35 }
 0x744   :  { %v224_v36 = vpop.xlane.xlu1 %223 }
 0x745   :  { %v225_v37 = vsel %vm221_vm5, %v224_v36, %v211_v29 }
 0x746   :  { %v236_v39 = vmul.f32 %v232_v33, %v225_v37 }
 0x748   :  { %v242_v40 = vpop.xlane.xlu0 %241  ;;  %237 = vadd.xlane.f32.xlu1 %v236_v39 }
 0x749   :  { %v243_v42 = vsel %vm235_vm6, %v242_v40, %v229_v34 }
 0x74a   :  { %v254_v44 = vmul.f32 %v246_v41, %v243_v42 }
 0x74c   :  { %255 = vadd.xlane.f32.xlu0 %v254_v44 }
 0x7d1   :  { %v238_v46 = vpop.xlane.xlu1 %237 }
 0x7d2   :  { %v239_v47 = vsel %vm235_vm6, %v238_v46, %v225_v37 }
 0x7d3   :  { %v250_v49 = vmul.f32 %v246_v41, %v239_v47 }
 0x7d5   :  { %v256_v50 = vpop.xlane.xlu0 %255  ;;  %251 = vadd.xlane.f32.xlu1 %v250_v49 }
 0x7d6   :  { %v257_v52 = vsel %vm249_vm7, %v256_v50, %v243_v42 }
 0x7d7   :  { %v268_v53 = vmul.f32 %v260_v51, %v257_v52 }
 0x7d9   :  { %269 = vadd.xlane.f32.xlu0 %v268_v53 }
 0x85e   :  { %v252_v54 = vpop.xlane.xlu1 %251 }
 0x85f   :  { %v253_v55 = vsel %vm249_vm7, %v252_v54, %v239_v47 }
 0x860   :  { %v264_v56 = vmul.f32 %v260_v51, %v253_v55 }
 0x862   :  { %v270_v57 = vpop.xlane.xlu0 %269  ;;  %265 = vadd.xlane.f32.xlu1 %v264_v56 }
 0x863   :  { %v271_v58 = vsel %vm263_vm8, %v270_v57, %v257_v52 }
 0x864   :  { %v278_v59 = vmul.f32 %v379_v45, %v271_v58 }
 0x866   :  { %v280_v60 = vsel %vm279_vm9, %v271_v58, %v278_v59 }
 0x867   :  { %316 = vst [vmem:[%s404_s1 + $0x8] sm:$0xff] %v280_v60 }
 0x8eb   :  { %v266_v61 = vpop.xlane.xlu1 %265 }
 0x8ec   :  { %v267_v62 = vsel %vm263_vm8, %v266_v61, %v253_v55 }
 0x8ed   :  { %v273_v63 = vmul.f32 %v359_v7, %v267_v62 }
 0x8ef   :  { %v275_v2 = vsel %vm274_vm10, %v267_v62, %v273_v63 }
 0x8f0   :  { %314 = vst [vmem:[%s404_s1] sm:$0xff] %v275_v2 }

// kernel: custom-call.15
= control target key start
LH: loop header
LB: loop body
LE: loop exit
PB: predicated region body
PF: predicated region fallthrough
CT: control target
= control target key end

     0   :  { %5 = vsyncpa [#allocation6], 0  ;;  %v77_v1 = vlaneseq  ;;  %v534_v2 = vmov 0   ;;  %s563_s14 = smov 0   ;;  %s604_s0 = inlined_call_operand.vmem [shape: f32[4,4], index: 0, kind: input, shape index: {}]   ;;  %s605_s1 = inlined_call_operand.vmem [shape: f32[4,4], index: 1, kind: output, shape index: {0}]   ;;  %s606_s2 = inlined_call_operand.hbm [shape: s32[4], index: 2, kind: output, shape index: {1}]   ;;  %s607_s3 = inlined_call_operand.vmem [shape: s32[4], index: 3, kind: output, shape index: {2}]  }
   0x1   :  { %v67_v0 = vld [vmem:[%s604_s0] sm:$0xf]  ;;  %76 = vst [vmem:[#allocation4] sm:$0x1] %v534_v2 }
   0x2   :  { %68 = vst [vmem:[#allocation1] sm:$0xf] %v67_v0  ;;  %v560_v3 = vshrl.u32 %v77_v1, 7 }
   0x4   :  { %81 = vst [vmem:[#allocation9] sm:$0xff] %v560_v3 }
   0x9   :  { %v72_v4 = vld [vmem:[#allocation1] sm:$0xf] }
   0xa   :  { %73 = vst [vmem:[#allocation0] sm:$0xf] %v72_v4 }
  0x11   :  { %v74_v5 = vld [vmem:[#allocation0] sm:$0xff] }
  0x12   :  { %75 = vst [vmem:[#allocation2] sm:$0xff] %v74_v5 }
  0x13 LB: > { %vm97_vm0 = vcmp.lt.s32.totalorder %v560_v3, 4  ;;  %v570_v8 = vstv %s532_s14  ;;  %s138_s0 = ssub.s32 128, %s532_s14  ;;  %v144_v38 = vand.u32 127, %v77_v1  ;;  %v147_v40 = vld [vmem:[#allocation4] ss:$0 sm:$0xff]  ;;  %s150_s15 = scalar_lea.vmem [#allocation2], %s532_s14  ;;  %s532_s14 = sphi %s563_s14, %s87_s14  }
  0x14   : > { %vm96_vm1 = vcmp.ge.s32.totalorder %v560_v3, %v570_v8  ;;  %s156_s17 = scalar_lea.vmem [#allocation9], %s532_s14  ;;  %vm176_vm15 = vcmp.gt.s32.totalorder %v560_v3, %v570_v8  ;;  %s87_s14 = sadd.s32 1, %s532_s14  }
  0x15   : > { %vm98_vm3 = vmand %vm96_vm1, %vm97_vm0  ;;  %vm168_vm12 = vcmp.gt.s32.totalorder %v144_v38, %v570_v8  ;;  %vm145_vm13 = vcmp.eq.s32.totalorder %v144_v38, %v570_v8  ;;  %v158_v42 = vld [vmem:[%s156_s17] ss:$0 sm:$0xff]  ;;  %p84_p0 = scmp.ge.s32.totalorder %s87_s14, 4  }
  0x16   : > { %vm180_vm1 = vmand %vm176_vm15, %vm145_vm13  ;;  %s535_s20 = smov (%p84_p0), [#allocation5]  }
  0x17   :  { %s328_s21 = sshll.u32 (%p84_p0), %s535_s20, 4  ;;  %s329_s21 = int_to_ptr.vmem [resolvable:$true] %s328_s21 }
  0x18   :  { %s504_s24 = scalar_lea.vmem (%p84_p0), %s329_s21, 16  ;;  %s508_s25 = scalar_lea.vmem (%p84_p0), %s329_s21, 32 }
  0x19   : > { %v92_v6 = vld [vmem:[#allocation2] sm:$0xff]  ;;  %v152_v41 = vld [vmem:[%s150_s15] ss:$0 sm:$0xff]  ;;  %p505_p1 = scmp.ne.s32.totalorder (%p84_p0), %s329_s21, %s504_s24  ;;  %p509_p2 = scmp.lt.s32.totalorder (%p84_p0), %s329_s21, %s329_s21 }
  0x1a   : > { %v93_v7 = vand.u32 2147483647, %v92_v6  ;;  %p510_p3 = scmp.lt.s32.totalorder (%p84_p0), %s508_s25, %s504_s24 }
  0x1c   : > { %vm483_vm2 = vcmp.gt.f32.partialorder %v93_v7, -inf  ;;  %p511_p4 = por (%p84_p0), %p510_p3, %p509_p2 }
  0x1d   : > { %vm100_vm4 = vmand %vm98_vm3, %vm483_vm2 }
  0x1e   : > { %v101_v9 = vsel %vm100_vm4, %v560_v3, %v570_v8  ;;  %v102_v10 = vsel %vm100_vm4, %v93_v7, -inf  ;;  %p512_p5 = pnand (%p84_p0), %p511_p4, %p505_p1 }
  0x1f   : > { %v103_v11 = vrot.slane %v102_v10, 1  ;;  %v104_v12 = vrot.slane %v101_v9, 1 }
  0x21   : > { %vm105_vm5 = vcmp.ge.f32.partialorder %v103_v11, %v102_v10  ;;  %v108_v13 = vrot.slane %v103_v11, 1  ;;  %v109_v14 = vrot.slane %v104_v12, 1 }
  0x22   : > { %v106_v15 = vsel %vm105_vm5, %v103_v11, %v102_v10  ;;  %v107_v16 = vsel %vm105_vm5, %v104_v12, %v101_v9 }
  0x23   : > { %vm110_vm6 = vcmp.ge.f32.partialorder %v108_v13, %v106_v15  ;;  %v113_v17 = vrot.slane %v108_v13, 1  ;;  %v114_v18 = vrot.slane %v109_v14, 1 }
  0x24   : > { %v111_v19 = vsel %vm110_vm6, %v108_v13, %v106_v15  ;;  %v112_v20 = vsel %vm110_vm6, %v109_v14, %v107_v16 }
  0x25   : > { %vm115_vm7 = vcmp.ge.f32.partialorder %v113_v17, %v111_v19  ;;  %v118_v21 = vrot.slane %v113_v17, 1  ;;  %v119_v22 = vrot.slane %v114_v18, 1 }
  0x26   : > { %v116_v23 = vsel %vm115_vm7, %v113_v17, %v111_v19  ;;  %v117_v24 = vsel %vm115_vm7, %v114_v18, %v112_v20 }
  0x27   : > { %vm120_vm8 = vcmp.ge.f32.partialorder %v118_v21, %v116_v23  ;;  %v123_v25 = vrot.slane %v118_v21, 1  ;;  %v124_v26 = vrot.slane %v119_v22, 1 }
  0x28   : > { %v121_v27 = vsel %vm120_vm8, %v118_v21, %v116_v23  ;;  %v122_v28 = vsel %vm120_vm8, %v119_v22, %v117_v24 }
  0x29   : > { %vm125_vm9 = vcmp.ge.f32.partialorder %v123_v25, %v121_v27  ;;  %v128_v29 = vrot.slane %v123_v25, 1  ;;  %v129_v30 = vrot.slane %v124_v26, 1 }
  0x2a   : > { %v126_v31 = vsel %vm125_vm9, %v123_v25, %v121_v27  ;;  %v127_v32 = vsel %vm125_vm9, %v124_v26, %v122_v28 }
  0x2b   : > { %vm130_vm10 = vcmp.ge.f32.partialorder %v128_v29, %v126_v31  ;;  %v133_v33 = vrot.slane %v128_v29, 1  ;;  %v134_v34 = vrot.slane %v129_v30, 1 }
  0x2c   : > { %v131_v35 = vsel %vm130_vm10, %v128_v29, %v126_v31  ;;  %v132_v36 = vsel %vm130_vm10, %v129_v30, %v127_v32 }
  0x2d   : > { %vm135_vm11 = vcmp.ge.f32.partialorder %v133_v33, %v131_v35 }
  0x2e   : > { %v137_v37 = vsel %vm135_vm11, %v134_v34, %v132_v36 }
  0x2f   : > { %139 = vrot.lane.b32.xlu0 %v137_v37, %s138_s0 }
  0xa1   : > { %v140_v39 = vpop.permute.xlu0 %139 }
  0xa2   : > { %490 = vpush %v140_v39 }
  0xd3   : > { %s491_s16 = spop %490 }
  0xd4   : > { %v146_v43 = vstv %s491_s16  ;;  %s151_s18 = scalar_lea.vmem [#allocation2], %s491_s16  ;;  %s157_s19 = scalar_lea.vmem [#allocation9], %s491_s16 }
  0xd5   : > { %v153_v44 = vld [vmem:[%s151_s18] ss:$0 sm:$0xff]  ;;  %v148_v46 = vsel %vm145_vm13, %v146_v43, %v147_v40 }
  0xd6   : > { %v159_v45 = vld [vmem:[%s157_s19] ss:$0 sm:$0xff]  ;;  %154 = vst [vmem:[%s151_s18] sm:$0x1] %v152_v41  ;;  %vm162_vm14 = vcmp.ne.f32.partialorder %v153_v44, 0.0  ;;  %149 = vst [vmem:[#allocation4] sm:$0x1] %v148_v46 }
  0xd7   : > { %160 = vst [vmem:[%s157_s19] sm:$0x1] %v158_v42  ;;  %155 = vst [vmem:[%s150_s15] sm:$0x1] %v153_v44  ;;  %v169_v53 = vsel %vm168_vm12, %v153_v44, 0.0 }
  0xd8   : > { %161 = vst [vmem:[%s156_s17] sm:$0x1] %v159_v45  ;;  %vm163_vm0 = vmand %vm145_vm13, %vm162_vm14 }
  0xd9   : > { %v164_v47 = vsel %vm163_vm0, %v153_v44, 1.0 }
  0xda   : > { %v177_v48 = vsel %vm176_vm15, %v164_v47, 1.0 }
  0xdb   : > { %502 = vrcp.f32 %v177_v48 }
  0xdd   :  { %v248_v59 = vld [vmem:[#allocation4] sm:$0x1] (%p84_p0) }
  0xde   : > { %v173_v50 = vld [vmem:[#allocation2] sm:$0xff]  ;;  %251 = vst [vmem:[#allocation5] sm:$0x1] (%p84_p0), %v248_v59 }
  0xdf   :  { %v187_v57 = vld [vmem:[#allocation9] sm:$0xff] (%p84_p0) }
  0xe8   : > { %v503_v49 = vpop.eup %502 }
  0xe9   : > { %v179_v51 = vmul.f32 %v503_v49, %v173_v50 }
  0xeb   : > { %v181_v52 = vsel %vm180_vm1, %v179_v51, 0.0 }
  0xec   : > { %182 = vadd.xlane.f32.xlu0 %v181_v52 }
 0x119   :  { %203 = vxpose.xlu0.b32.start.end [1/1] (short) (narrow) (%p84_p0), %v187_v57, 8 }
 0x175   : > { %v183_v54 = vpop.xlane.xlu0 %182 }
 0x176   : > { %v184_v55 = vmul.f32 %v183_v54, %v169_v53  ;;  %86 = sbr.rel (!%p84_p0) target bundleno = 19 (0x13), region = 163 }
 0x178   : > { %v185_v56 = vsub.f32 %v179_v51, %v184_v55 }
 0x17a   : > { %186 = vst [vmem:[#allocation2] sm:$0xff] %v185_v56 }
 0x181   :  { %v240_v58 = vld [vmem:[#allocation2] sm:$0xf] }
 0x182   :  { %243 = vst [vmem:[#allocation3] sm:$0xf] %v240_v58 }
 0x189   :  { %v321_v60 = vld [vmem:[#allocation3] sm:$0xf] }
 0x18a   :  { %322 = vst [vmem:[%s605_s1] sm:$0xf] %v321_v60 }
 0x18b   :  { %515 = shalt.err (!%p512_p5)
}
 0x18c   :  { %331 = dma.vmem_to_hbm [thread:$0]  %s329_s21, 16, %s606_s2, [#allocation6]  }
 0x195   :  { %v219_v61 = vpop.trf.xlu0 }
 0x196   :  { %235 = vst [vmem:[#allocation7] sm:$0x1] %v219_v61 }
 0x19d   :  { %v256_v62 = vld [vmem:[#allocation7] sm:$0x1] }
 0x19e   :  { %259 = vst [vmem:[#allocation8] sm:$0x1] %v256_v62 }
 0x1a5   :  { %v395_v63 = vld [vmem:[#allocation8] sm:$0x1] }
 0x1a6   :  { %396 = vst [vmem:[%s607_s3] sm:$0x1] %v395_v63 }
 0x1a7   :  { %528 = dma.done.wait [#allocation6], 16  }
 0x1a8   :  { %529 = vsyncadd [#allocation6], 4294967280 }
 0x1a9   :  { %402 = vsyncpa [#allocation6], 1 }

// kernel: custom-call.17
= control target key start
LH: loop header
LB: loop body
LE: loop exit
PB: predicated region body
PF: predicated region fallthrough
CT: control target
= control target key end

     0   :  { %v40_v1 = vlaneseq  ;;  %v155_v11 = vmov -1.0   ;;  %s172_s0 = inlined_call_operand.vmem [shape: f32[1,4,4], index: 0, kind: input, shape index: {}]   ;;  %s173_s1 = inlined_call_operand.vmem [shape: f32[1,4,4], index: 1, kind: output, shape index: {}]  }
   0x1   :  { %v18_v0 = vld [vmem:[%s172_s0] sm:$0xf] }
   0x2   :  { %19 = vst [vmem:[#allocation1] sm:$0xf] %v18_v0  ;;  %v41_v3 = vand.u32 127, %v40_v1  ;;  %v44_v4 = vshrl.u32 %v40_v1, 7 }
   0x4   :  { %vm42_vm0 = vcmp.lt.s32.totalorder %v41_v3, 4  ;;  %vm51_vm1 = vcmp.ge.s32.totalorder %v44_v4, %v41_v3  ;;  %vm46_vm2 = vcmp.eq.s32.totalorder %v44_v4, %v41_v3  ;;  %vm65_vm4 = vcmp.eq.s32.totalorder %v41_v3, 0 }
   0x5   :  { %vm52_vm3 = vmand %vm51_vm1, %vm42_vm0  ;;  %vm62_vm5 = vcmp.eq.s32.totalorder %v41_v3, %v44_v4  ;;  %v66_v12 = vsel %vm65_vm4, 1.0, %v155_v11  ;;  %vm73_vm6 = vcmp.eq.s32.totalorder %v41_v3, 1  ;;  %vm83_vm7 = vcmp.eq.s32.totalorder %v41_v3, 2 }
   0x6   :  { %v67_v13 = vsel %vm62_vm5, %v66_v12, 0.0  ;;  %vm93_vm8 = vcmp.eq.s32.totalorder %v41_v3, 3 }
   0x9   :  { %v38_v2 = vld [vmem:[#allocation1] sm:$0xf] }
   0xa   :  { %39 = vst [vmem:[#allocation0] sm:$0xf] %v38_v2 }
  0x11   :  { %v47_v5 = vld [vmem:[#allocation0] sm:$0xff] }
  0x12   :  { %v48_v6 = vsel %vm46_vm2, %v47_v5, 0.0  ;;  %v53_v7 = vsel %vm52_vm3, %v47_v5, 0.0 }
  0x13   :  { %49 = vadd.xlane.f32.xlu0 %v48_v6 }
  0x9c   :  { %v50_v8 = vpop.xlane.xlu0 %49 }
  0x9d   :  { %153 = vrcp.f32 %v50_v8  ;;  %vm100_vm9 = vweird.f32 %v50_v8 }
  0xaa   :  { %v154_v9 = vpop.eup %153 }
  0xab   :  { %v55_v10 = vmul.f32 %v154_v9, %v53_v7 }
  0xad   :  { %56 = vst [vmem:[#allocation4] sm:$0xff] %v55_v10 }
  0xb4   :  { %v69_v14 = vld [vmem:[#allocation4 + $0x1] ss:$0 sm:$0xff]  ;;  %v79_v17 = vld [vmem:[#allocation4 + $0x2] ss:$0 sm:$0xff]  ;;  %v89_v22 = vld [vmem:[#allocation4 + $0x3] ss:$0 sm:$0xff] }
  0xb5   :  { %v70_v15 = vxor.u32 2147483648, %v69_v14  ;;  %v80_v19 = vxor.u32 2147483648, %v79_v17  ;;  %v90_v24 = vxor.u32 2147483648, %v89_v22 }
  0xb7   :  { %v74_v16 = vmul.f32 %v70_v15, %v67_v13 }
  0xb9   :  { %75 = vadd.xlane.f32.xlu0 %v74_v16 }
 0x142   :  { %v76_v18 = vpop.xlane.xlu0 %75 }
 0x143   :  { %v77_v20 = vsel %vm73_vm6, %v76_v18, %v67_v13 }
 0x144   :  { %v84_v21 = vmul.f32 %v80_v19, %v77_v20 }
 0x146   :  { %85 = vadd.xlane.f32.xlu1 %v84_v21 }
 0x1cf   :  { %v86_v23 = vpop.xlane.xlu1 %85 }
 0x1d0   :  { %v87_v25 = vsel %vm83_vm7, %v86_v23, %v77_v20 }
 0x1d1   :  { %v94_v26 = vmul.f32 %v90_v24, %v87_v25 }
 0x1d3   :  { %95 = vadd.xlane.f32.xlu1 %v94_v26 }
 0x25c   :  { %v96_v27 = vpop.xlane.xlu1 %95 }
 0x25d   :  { %v97_v28 = vsel %vm93_vm8, %v96_v27, %v87_v25 }
 0x25e   :  { %v99_v29 = vmul.f32 %v154_v9, %v97_v28 }
 0x260   :  { %v101_v30 = vsel %vm100_vm9, %v97_v28, %v99_v29 }
 0x261   :  { %102 = vst [vmem:[#allocation2] sm:$0xff] %v101_v30 }
 0x268   :  { %v107_v31 = vld [vmem:[#allocation2] sm:$0xf] }
 0x269   :  { %110 = vst [vmem:[#allocation3] sm:$0xf] %v107_v31 }
 0x270   :  { %v127_v32 = vld [vmem:[#allocation3] sm:$0xf] }
 0x271   :  { %128 = vst [vmem:[%s173_s1] sm:$0xf] %v127_v32 }

// kernel: custom-call.16
= control target key start
LH: loop header
LB: loop body
LE: loop exit
PB: predicated region body
PF: predicated region fallthrough
CT: control target
= control target key end

     0   :  { %v40_v1 = vlaneseq  ;;  %v154_v11 = vmov -1.0   ;;  %s171_s0 = inlined_call_operand.vmem [shape: f32[1,4,4], index: 0, kind: input, shape index: {}]   ;;  %s172_s1 = inlined_call_operand.vmem [shape: f32[1,4,4], index: 1, kind: output, shape index: {}]  }
   0x1   :  { %v18_v0 = vld [vmem:[%s171_s0] sm:$0xf] }
   0x2   :  { %19 = vst [vmem:[#allocation1] sm:$0xf] %v18_v0  ;;  %v41_v3 = vand.u32 127, %v40_v1  ;;  %v44_v4 = vshrl.u32 %v40_v1, 7 }
   0x4   :  { %vm42_vm0 = vcmp.lt.s32.totalorder %v41_v3, 4  ;;  %vm51_vm1 = vcmp.le.s32.totalorder %v44_v4, %v41_v3  ;;  %vm46_vm2 = vcmp.eq.s32.totalorder %v44_v4, %v41_v3  ;;  %vm65_vm4 = vcmp.eq.s32.totalorder %v41_v3, 3 }
   0x5   :  { %vm52_vm3 = vmand %vm51_vm1, %vm42_vm0  ;;  %vm62_vm5 = vcmp.eq.s32.totalorder %v41_v3, %v44_v4  ;;  %v66_v12 = vsel %vm65_vm4, 1.0, %v154_v11  ;;  %vm73_vm6 = vcmp.eq.s32.totalorder %v41_v3, 2  ;;  %vm83_vm7 = vcmp.eq.s32.totalorder %v41_v3, 1 }
   0x6   :  { %v67_v13 = vsel %vm62_vm5, %v66_v12, 0.0  ;;  %vm92_vm8 = vcmp.eq.s32.totalorder %v41_v3, 0 }
   0x9   :  { %v38_v2 = vld [vmem:[#allocation1] sm:$0xf] }
   0xa   :  { %39 = vst [vmem:[#allocation0] sm:$0xf] %v38_v2 }
  0x11   :  { %v47_v5 = vld [vmem:[#allocation0] sm:$0xff] }
  0x12   :  { %v48_v6 = vsel %vm46_vm2, %v47_v5, 0.0  ;;  %v53_v7 = vsel %vm52_vm3, %v47_v5, 0.0 }
  0x13   :  { %49 = vadd.xlane.f32.xlu0 %v48_v6 }
  0x9c   :  { %v50_v8 = vpop.xlane.xlu0 %49 }
  0x9d   :  { %152 = vrcp.f32 %v50_v8  ;;  %vm99_vm9 = vweird.f32 %v50_v8 }
  0xaa   :  { %v153_v9 = vpop.eup %152 }
  0xab   :  { %v55_v10 = vmul.f32 %v153_v9, %v53_v7 }
  0xad   :  { %56 = vst [vmem:[#allocation4] sm:$0xff] %v55_v10 }
  0xb4   :  { %v69_v14 = vld [vmem:[#allocation4 + $0x2] ss:$0 sm:$0xff]  ;;  %v79_v17 = vld [vmem:[#allocation4 + $0x1] ss:$0 sm:$0xff]  ;;  %v88_v22 = vld [vmem:[#allocation4] ss:$0 sm:$0xff] }
  0xb5   :  { %v70_v15 = vxor.u32 2147483648, %v69_v14  ;;  %v80_v19 = vxor.u32 2147483648, %v79_v17  ;;  %v89_v24 = vxor.u32 2147483648, %v88_v22 }
  0xb7   :  { %v74_v16 = vmul.f32 %v70_v15, %v67_v13 }
  0xb9   :  { %75 = vadd.xlane.f32.xlu0 %v74_v16 }
 0x142   :  { %v76_v18 = vpop.xlane.xlu0 %75 }
 0x143   :  { %v77_v20 = vsel %vm73_vm6, %v76_v18, %v67_v13 }
 0x144   :  { %v84_v21 = vmul.f32 %v80_v19, %v77_v20 }
 0x146   :  { %85 = vadd.xlane.f32.xlu1 %v84_v21 }
 0x1cf   :  { %v86_v23 = vpop.xlane.xlu1 %85 }
 0x1d0   :  { %v87_v25 = vsel %vm83_vm7, %v86_v23, %v77_v20 }
 0x1d1   :  { %v93_v26 = vmul.f32 %v89_v24, %v87_v25 }
 0x1d3   :  { %94 = vadd.xlane.f32.xlu1 %v93_v26 }
 0x25c   :  { %v95_v27 = vpop.xlane.xlu1 %94 }
 0x25d   :  { %v96_v28 = vsel %vm92_vm8, %v95_v27, %v87_v25 }
 0x25e   :  { %v98_v29 = vmul.f32 %v153_v9, %v96_v28 }
 0x260   :  { %v100_v30 = vsel %vm99_vm9, %v96_v28, %v98_v29 }
 0x261   :  { %101 = vst [vmem:[#allocation2] sm:$0xff] %v100_v30 }
 0x268   :  { %v106_v31 = vld [vmem:[#allocation2] sm:$0xf] }
 0x269   :  { %109 = vst [vmem:[#allocation3] sm:$0xf] %v106_v31 }
 0x270   :  { %v126_v32 = vld [vmem:[#allocation3] sm:$0xf] }
 0x271   :  { %127 = vst [vmem:[%s172_s1] sm:$0xf] %v126_v32 }

// kernel: zak_gpr_forward.2
= control target key start
LH: loop header
LB: loop body
LE: loop exit
PB: predicated region body
PF: predicated region fallthrough
CT: control target
= control target key end

     0   :  { %v260_v0 = vmov 0   ;;  %v261_v3 = vmov 0.0   ;;  %vm262_vm0 = vmmov 0   ;;  %vm63_vm1 = vcmask 130048   ;;  %s263_s12 = smov 1   ;;  %s332_s0 = inlined_call_operand.vmem [shape: f32[8,1], index: 0, kind: input, shape index: {}]   ;;  %s333_s1 = inlined_call_operand.vmem [shape: f32[8,1], index: 1, kind: input, shape index: {}]   ;;  %s334_s4 = inlined_call_operand.vmem [shape: f32[16,16], index: 4, kind: input, shape index: {}]   ;;  %s335_s5 = inlined_call_operand.vmem [shape: f32[16,5], index: 5, kind: input, shape index: {}]   ;;  %s336_s2 = inlined_call_operand.vmem [shape: f32[1,16], index: 2, kind: input, shape index: {}]   ;;  %s337_s3 = inlined_call_operand.vmem [shape: f32[1,16], index: 3, kind: input, shape index: {}]   ;;  %s338_s6 = inlined_call_operand.vmem [shape: f32[8,128], index: 6, kind: output, shape index: {}]  }
   0x1   :  { %257 = vset.pattern.permute.xlu0 %v260_v0  ;;  %v23_v1 = vld [vmem:[%s332_s0] sm:$0xff]  ;;  %239 = vmatprep.subr.mxu0 %v261_v3  ;;  %v62_v4 = vld [vmem:[%s334_s4 + $0x8] sm:$0xff]  ;;  %216 = vst [vmem:[%s338_s6] sm:$0xff] %v261_v3  ;;  %vm217_vm2 = vcmask 7168   ;;  %vm223_vm3 = vcmask 48136  }
   0x2   :  { %27 = vperm.xlu0 %257, %v23_v1   ;;  %v37_v2 = vld [vmem:[%s333_s1] sm:$0xff]  ;;  %243 = vmatprep.mubr.msk.f32.mxu0 %vm262_vm0, %v261_v3  ;;  %v142_v6 = vld [vmem:[%s335_s5 + $0x8] sm:$0xff] }
   0x3   :  { %v61_v5 = vld [vmem:[%s334_s4] sm:$0xff]  ;;  %240 = vmatpush3.msra.mxu0 %v62_v4  ;;  %246 = vmatprep.subr.mxu1 %v261_v3 }
   0x4   :  { %241 = vmatprep.subr.mxu0 %v261_v3  ;;  %250 = vmatprep.mubr.msk.f32.mxu1 %vm262_vm0, %v261_v3  ;;  %v229_v7 = vld [vmem:[%s336_s2] ss:$0 sm:$0xff] }
   0x5   :  { %242 = vmatpush3.msra.mxu0 %v61_v5  ;;  %247 = vmatpush3.msra.mxu1 %v142_v6  ;;  %v230_v10 = vld [vmem:[%s337_s3] ss:$0 sm:$0xff] }
   0x6   :  { %41 = vperm.xlu0 %257, %v37_v2   ;;  %248 = vmatprep.subr.mxu1 %v261_v3  ;;  %v141_v21 = vld [vmem:[%s335_s5] sm:$0xff] }
   0x7   :  { %249 = vmatpush3.msra.mxu1 %v141_v21 }
  0x7d   :  { %v28_v8 = vpop.permute.xlu0 %27 }
  0x7e   :  { %v36_v9 = vsub.f32 %v28_v8, %v229_v7 }
  0x80   :  { %v51_v11 = vmul.f32 %v36_v9, %v36_v9 }
  0x81   :  { %v42_v12 = vpop.permute.xlu0 %41 }
  0x82   :  { %v52_v13 = vsub.f32 0.0, %v51_v11  ;;  %v50_v14 = vsub.f32 %v42_v12, %v230_v10 }
  0x84   :  { %v55_v15 = vmul.f32 %v50_v14, %v50_v14  ;;  %v54_v16 = vmul.f32 0.125, %v52_v13 }
  0x86   :  { %v57_v17 = vmul.f32 0.1, %v55_v15 }
  0x88   :  { %v58_v18 = vsub.f32 %v54_v16, %v57_v17 }
  0x8a   :  { %v59_v19 = vmul.f32 1.442695, %v58_v18 }
  0x8c   :  { %258 = vpow2.f32 %v59_v19 }
  0x99   :  { %v259_v20 = vpop.eup %258 }
  0x9a   :  { %244 = vmatmul.mubr.msk.f32.vlgmr.msra.gmra.mxu0 %vm63_vm1, %v259_v20 }
 0x15a   :  { %v133_v22 = vpop.f32.mrf.mxu0 }
 0x15b   :  { %251 = vmatmul.mubr.msk.f32.vlgmr.msra.gmra.mxu1 %vm63_vm1, %v133_v22  ;;  %v137_v23 = vmul.f32 %v259_v20, %v133_v22 }
 0x15c   :  { %v245_v24 = vpop.f32.mrf.mxu0 }
 0x15d   :  { %v138_v25 = vsel %vm63_vm1, %v137_v23, 0.0 }
 0x15e   :  { %139 = vadd.xlane.f32.xlu1 %v138_v25 }
 0x1e7   :  { %v140_v26 = vpop.xlane.xlu1 %139 }
 0x1e8   :  { %218 = vst.msk [vmem:[%s338_s6] sm:$0xff] %vm217_vm2, %v140_v26 }
 0x21b   :  { %v212_v27 = vpop.f32.mrf.mxu1 }
 0x21c   :  { %220 = vrot.lane.b32.xlu1 %v212_v27, %s263_s12 }
 0x21d   :  { %v252_v28 = vpop.f32.mrf.mxu1 }
 0x28e   :  { %v221_v29 = vpop.permute.xlu1 %220 }
 0x28f   :  { %224 = vst.msk [vmem:[%s338_s6] sm:$0xff] %vm223_vm3, %v221_v29 }

// kernel: zak_gpr_forward.3
= control target key start
LH: loop header
LB: loop body
LE: loop exit
PB: predicated region body
PF: predicated region fallthrough
CT: control target
= control target key end

     0   :  { %14 = vsyncpa [#allocation4], 0  ;;  %s714_s0 = inlined_call_operand.vmem [shape: f32[8,1], index: 0, kind: input, shape index: {}]   ;;  %s715_s1 = inlined_call_operand.vmem [shape: f32[8,1], index: 1, kind: input, shape index: {}]   ;;  %s716_s2 = inlined_call_operand.vmem [shape: f32[1,16], index: 2, kind: input, shape index: {}]   ;;  %s717_s3 = inlined_call_operand.vmem [shape: f32[1,16], index: 3, kind: input, shape index: {}]   ;;  %s718_s4 = inlined_call_operand.vmem [shape: f32[16,16], index: 4, kind: input, shape index: {}]   ;;  %s719_s5 = inlined_call_operand.vmem [shape: f32[1,16], index: 5, kind: input, shape index: {}]   ;;  %s720_s6 = inlined_call_operand.vmem [shape: f32[16,1], index: 6, kind: input, shape index: {}]   ;;  %s721_s7 = inlined_call_operand.vmem [shape: f32[8,1], index: 7, kind: input, shape index: {}]   ;;  %s722_s8 = inlined_call_operand.vmem [shape: f32[1,2], index: 8, kind: input, shape index: {}]   ;;  %s723_s9 = inlined_call_operand.hbm [shape: f32[16,16], index: 9, kind: output, shape index: {}]  }
   0x1   :  { %15 = vsyncpa [#allocation3], 0  ;;  %s38_s11 = sshll.u32 %s722_s8, 4  ;;  %s39_s11 = int_to_ptr.vmem [resolvable:$true] %s38_s11 }
   0x2   :  { %s575_s12 = scalar_lea.vmem %s39_s11, 16  ;;  %p580_p1 = scmp.lt.s32.totalorder %s39_s11, %s39_s11 }
   0x3   :  { %p576_p0 = scmp.ne.s32.totalorder %s39_s11, %s575_s12  ;;  %p581_p2 = scmp.lt.s32.totalorder %s575_s12, %s575_s12 }
   0x5   :  { %p582_p3 = por %p581_p2, %p580_p1 }
   0x7   :  { %p583_p4 = pnand %p582_p3, %p576_p0 }
   0x9   :  { %586 = shalt.err (!%p583_p4)
}
   0xa   :  { %s611_s13 = smov [#allocation2]  }
   0xb   :  { %41 = dma.vmem_to_smem %s39_s11, 16, %s611_s13, [#allocation4]  }
   0xc   :  { %607 = dma.done.wait [#allocation4], 16  }
   0xd   :  { %608 = vsyncadd [#allocation4], 4294967280 }
   0xe   :  { %45 = sfence }
   0xf   :  { %v88_v0 = vld [vmem:[%s720_s6 + $0x8] sm:$0xff]  ;;  %v46_v1 = vld [vmem:[%s714_s0] sm:$0xff]  ;;  %v612_v2 = vmov 0   ;;  %v613_v6 = vmov 0.0   ;;  %vm614_vm0 = vmmov 0   ;;  %vm107_vm1 = vcmask 130048  }
  0x10   :  { %568 = vset.pattern.permute.xlu1 %v612_v2  ;;  %567 = vset.pattern.permute.xlu0 %v612_v2  ;;  %v87_v3 = vld [vmem:[%s720_s6] sm:$0xff]  ;;  %v85_v5 = vld [vmem:[%s718_s4 + $0x8] sm:$0xff]  ;;  %s615_s27 = smov [#allocation5]  }
  0x11   :  { %102 = vperm.xlu1 %568, %v88_v0   ;;  %50 = vperm.xlu0 %567, %v46_v1   ;;  %v60_v4 = vld [vmem:[%s715_s1] sm:$0xff]  ;;  %s495_s28 = sshll.u32 %s615_s27, 4  ;;  %s496_s28 = int_to_ptr.vmem [resolvable:$true] %s495_s28 }
  0x12   :  { %532 = vmatprep.subr.mxu0 %v613_v6  ;;  %v84_v7 = vld [vmem:[%s718_s4] sm:$0xff]  ;;  %536 = vmatprep.mubr.msk.f32.mxu0 %vm614_vm0, %v613_v6  ;;  %s587_s29 = scalar_lea.vmem %s496_s28, 256  ;;  %p592_p6 = scmp.lt.s32.totalorder %s496_s28, %s496_s28 }
  0x13   :  { %533 = vmatpush3.msra.mxu0 %v85_v5  ;;  %539 = vmatprep.subr.mxu1 %v613_v6  ;;  %v507_v8 = vld [vmem:[%s716_s2] ss:$0 sm:$0xff]  ;;  %p588_p5 = scmp.ne.s32.totalorder %s496_s28, %s587_s29  ;;  %p593_p7 = scmp.lt.s32.totalorder %s587_s29, %s587_s29 }
  0x14   :  { %534 = vmatprep.subr.mxu0 %v613_v6  ;;  %543 = vmatprep.mubr.msk.f32.mxu1 %vm614_vm0, %v613_v6  ;;  %v509_v9 = vld [vmem:[%s719_s5] ss:$0 sm:$0xff]  ;;  %s185_s5 = sld [smem:[#allocation2]] }
  0x15   :  { %97 = vperm.xlu1 %568, %v87_v3   ;;  %64 = vperm.xlu0 %567, %v60_v4   ;;  %v508_v14 = vld [vmem:[%s717_s3] ss:$0 sm:$0xff]  ;;  %p594_p8 = por %p593_p7, %p592_p6 }
  0x16   :  { %535 = vmatpush3.msra.mxu0 %v84_v7  ;;  %v266_v27 = vld [vmem:[%s721_s7] sm:$0xff]  ;;  %s517_s7 = sld [smem:[#allocation2 + $0x1]] }
  0x17   :  { %p595_p9 = pnand %p594_p8, %p588_p5 }
  0x1a   :  { %v186_v36 = vstv %s185_s5 }
  0x1c   :  { %v483_v63 = vstv %s517_s7 }
  0x8c   :  { %v103_v10 = vpop.permute.xlu1 %102  ;;  %v51_v11 = vpop.permute.xlu0 %50 }
  0x8d   :  { %v106_v12 = vsub.f32 %v509_v9, %v103_v10  ;;  %v59_v13 = vsub.f32 %v51_v11, %v507_v8 }
  0x8f   :  { %v74_v15 = vmul.f32 %v59_v13, %v59_v13  ;;  %546 = vmatprep.subr.mxu0 %v106_v12  ;;  %540 = vmatpush3.msra.mxu1 %v106_v12 }
  0x90   :  { %v98_v16 = vpop.permute.xlu1 %97  ;;  %v65_v17 = vpop.permute.xlu0 %64  ;;  %541 = vmatprep.subr.mxu1 %v613_v6 }
  0x91   :  { %v75_v18 = vsub.f32 0.0, %v74_v15  ;;  %v105_v19 = vsub.f32 %v509_v9, %v98_v16  ;;  %v73_v20 = vsub.f32 %v65_v17, %v508_v14 }
  0x93   :  { %v78_v21 = vmul.f32 %v73_v20, %v73_v20  ;;  %367 = vxpose.xlu0.b32.start [1/2] (short) (narrow) %v105_v19, 16  ;;  %542 = vmatpush3.msra.mxu1 %v105_v19  ;;  %v77_v22 = vmul.f32 0.125, %v75_v18 }
  0x95   :  { %v80_v23 = vmul.f32 0.1, %v78_v21 }
  0x97   :  { %v81_v24 = vsub.f32 %v77_v22, %v80_v23  ;;  %368 = vxpose.xlu0.b32.end [2/2] (short) (narrow) %v106_v12, 16 }
  0x99   :  { %v82_v25 = vmul.f32 1.442695, %v81_v24 }
  0x9b   :  { %569 = vpow2.f32 %v82_v25 }
  0xa8   :  { %v570_v26 = vpop.eup %569 }
  0xa9   :  { %537 = vmatmul.mubr.msk.f32.vlgmr.msra.gmra.mxu0 %vm107_vm1, %v570_v26 }
  0xaa   :  { %547 = vmatpush3.msra.mxu0 %v106_v12  ;;  %550 = vmatprep.mubr.msk.f32.mxu0 %vm107_vm1, %v84_v7 }
  0xab   :  { %548 = vmatprep.subr.mxu0 %v105_v19 }
  0xac   :  { %549 = vmatpush3.msra.mxu0 %v105_v19 }
  0xad   :  { %551 = vmatmul.mubr.msk.f32.vlgmr.msra.gmra.mxu0 %vm107_vm1, %v85_v5 }
  0xc0   :  { %269 = vperm.xlu0 %567, %v266_v27  }
 0x10f   :  { %v383_v29 = vpop.trf.xlu0 }
 0x113   :  { %v384_v35 = vpop.trf.xlu0 }
 0x13b   :  { %v270_v42 = vpop.permute.xlu0 %269 }
 0x169   :  { %v177_v28 = vpop.f32.mrf.mxu0 }
 0x16a   :  { %v181_v30 = vmul.f32 %v570_v26, %v177_v28  ;;  %544 = vmatmul.mubr.msk.f32.vlgmr.msra.gmra.mxu1 %vm107_vm1, %v177_v28 }
 0x16b   :  { %v538_v31 = vpop.f32.mrf.mxu0  ;;  %557 = vmatprep.mubr.msk.f32.mxu1 %vm107_vm1, %v383_v29 }
 0x16c   :  { %v182_v32 = vsel %vm107_vm1, %v181_v30, 0.0 }
 0x16d   :  { %183 = vadd.xlane.f32.xlu1 %v182_v32  ;;  %v552_v33 = vpop.f32.mrf.mxu0 }
 0x16e   :  { %553 = vmatprep.subr.mxu1 %v552_v33 }
 0x16f   :  { %v358_v34 = vpop.f32.mrf.mxu0  ;;  %554 = vmatpush3.msra.mxu1 %v552_v33 }
 0x170   :  { %555 = vmatprep.subr.mxu1 %v358_v34 }
 0x171   :  { %556 = vmatpush3.msra.mxu1 %v358_v34 }
 0x172   :  { %558 = vmatmul.mubr.msk.f32.vlgmr.msra.gmra.mxu1 %vm107_vm1, %v384_v35 }
 0x1f6   :  { %v184_v37 = vpop.xlane.xlu1 %183 }
 0x1f7   :  { %v187_v38 = vsub.f32 %v186_v36, %v184_v37 }
 0x1f9   :  { %v188_v39 = vand.u32 2147483647, %v187_v38 }
 0x1fb   :  { %v189_v40 = vmax.f32 %v188_v39, 1e-30 }
 0x1fd   :  { %571 = vlog2.f32 %v189_v40 }
 0x1fe   :  { %573 = vrcp.f32 %v189_v40 }
 0x20a   :  { %v572_v41 = vpop.eup %571 }
 0x20b   :  { %v264_v44 = vmul.f32 0.6931472, %v572_v41  ;;  %v574_v48 = vpop.eup %573 }
 0x20d   :  { %v265_v49 = vsub.f32 0.0, %v264_v44 }
 0x22a   :  { %v259_v43 = vpop.f32.mrf.mxu1 }
 0x22b   :  { %v272_v45 = vsub.f32 %v270_v42, %v259_v43 }
 0x22c   :  { %v545_v46 = vpop.f32.mrf.mxu1 }
 0x22d   :  { %v273_v47 = vmul.f32 %v272_v45, %v272_v45 }
 0x22f   :  { %v275_v50 = vmul.f32 %v574_v48, %v273_v47 }
 0x231   :  { %v276_v51 = vsub.f32 %v265_v49, %v275_v50 }
 0x232   :  { %v559_v55 = vpop.f32.mrf.mxu1 }
 0x233   :  { %v512_v52 = vadd.f32 -1.837877, %v276_v51  ;;  %v482_v61 = vmul.f32 0.5, %v559_v55 }
 0x234   :  { %v471_v58 = vpop.f32.mrf.mxu1 }
 0x235   :  { %v278_v53 = vsel %vm107_vm1, %v512_v52, 0.0  ;;  %v481_v62 = vmul.f32 0.5, %v471_v58  ;;  %v485_v2 = vsub.f32 %v483_v63, %v482_v61 }
 0x236   :  { %v279_v54 = vrot.slane %v278_v53, 4 }
 0x237   :  { %v484_v3 = vsub.f32 %v483_v63, %v481_v62 }
 0x238   :  { %v280_v56 = vadd.f32 %v279_v54, %v278_v53 }
 0x23a   :  { %v281_v57 = vrot.slane %v280_v56, 2 }
 0x23c   :  { %v282_v59 = vadd.f32 %v281_v57, %v280_v56 }
 0x23e   :  { %v283_v60 = vrot.slane %v282_v59, 1 }
 0x240   :  { %v284_v0 = vadd.f32 %v283_v60, %v282_v59 }
 0x242   :  { %v285_v1 = vmul.f32 0.5, %v284_v0 }
 0x244   :  { %v487_v4 = vadd.f32 %v485_v2, %v285_v1  ;;  %v486_v5 = vadd.f32 %v484_v3, %v285_v1 }
 0x246   :  { %489 = vst.msk [vmem:[#allocation5 + $0x8] sm:$0xff] %vm107_vm1, %v487_v4  ;;  %488 = vst.msk [vmem:[#allocation5] sm:$0xff] %vm107_vm1, %v486_v5 }
 0x247   :  { %598 = shalt.err (!%p595_p9)
}
 0x248   :  { %s616_s30 = smov 128   ;;  %s617_s10 = smov 8  }
 0x249   :  { %501 = dma.vmem_to_hbm [thread:$0]  %s496_s28, 256, %s723_s9, [#allocation3], %s616_s30, %s616_s30, %s617_s10  }
 0x24a   :  { %609 = dma.done.wait [#allocation3], 256  }
 0x24b   :  { %610 = vsyncadd [#allocation3], 4294967040 }
 0x24c   :  { %505 = vsyncpa [#allocation3], 1 }
 0x24d   :  { %506 = vsyncpa [#allocation4], 1 }

</bundles_post_ra>
